<compile_context>
chip_gen: v7x
topology: tpu7x:2x2x1
jax: 0.10.0
libtpu: 0.0.40
codegen_flags: <defaults>
</compile_context>

<pallas_src>
import functools
import math

import jax
import jax.numpy as jnp
from jax.experimental import pallas as pl
from jax.experimental.pallas import tpu as pltpu


def _round_up(x, m):
    return (x + m - 1) // m * m


def _conv3d_tap_kernel(x_ref, w_ref, b_ref, o_ref, *, tap_offsets, out_lanes):
    """One batch sample: accumulate per-tap shifted-slice matmuls in f32.

    x_ref: (Cin_p, Lx)      bf16  padded sample, spatial flattened with the
                                  padded pitch (every tap = lane shift)
    w_ref: (T, Cout, Cin_p) bf16  per-tap weight matrices
    b_ref: (Cout, 1)        f32   bias
    o_ref: (Cout, L)        f32   padded-pitch output slab (lane-dense)
    """
    cout = o_ref.shape[0]
    # Bias folded into the accumulator init (hoisted broadcast, done once).
    acc = jnp.broadcast_to(b_ref[...], (cout, out_lanes)).astype(jnp.float32)
    for t, off in enumerate(tap_offsets):
        # Static lane-offset slice of the VMEM-resident sample: tap (kd,kh,kw)
        # contributes W_tap @ x_flat[:, q + off] for every output position q.
        x_t = x_ref[:, off:off + out_lanes]                   # (Cin_p, L) bf16
        acc = acc + jnp.dot(w_ref[t], x_t,
                            preferred_element_type=jnp.float32)
    o_ref[...] = acc.astype(o_ref.dtype)


@functools.partial(jax.jit, static_argnames=("padding",))
def conv3d_pallas(x_ncdhw, weight_oidhw, bias, padding=(1, 1, 1)):
    """3D convolution, stride 1, symmetric zero padding, with bias.

    x_ncdhw:      (N, Cin, D, H, W)
    weight_oidhw: (Cout, Cin, kD, kH, kW)
    bias:         (Cout,)
    returns:      (N, Cout, D_out, H_out, W_out)
    """
    N, Cin, D, H, W = x_ncdhw.shape
    Cout, Cin_w, kD, kH, kW = weight_oidhw.shape
    assert Cin_w == Cin
    pd, ph, pw = padding

    Dp, Hp, Wp = D + 2 * pd, H + 2 * ph, W + 2 * pw
    Do, Ho, Wo = Dp - kD + 1, Hp - kH + 1, Wp - kW + 1

    # Padded-pitch flattening geometry.
    P = Dp * Hp * Wp                      # flat padded spatial length (1000)
    sd, sh = Hp * Wp, Wp                  # strides of d / h in the flat index
    tap_offsets = tuple(kd * sd + kh * sh + kw
                        for kd in range(kD)
                        for kh in range(kH)
                        for kw in range(kW))
    T = len(tap_offsets)
    max_off = tap_offsets[-1]

    L = _round_up(P, 128)                 # accumulator / output lane width (1024)
    Lx = _round_up(L + max_off, 128)      # input lane width incl. shift slack (1280)
    Cin_p = _round_up(Cin, 8)             # pad channels to a full sublane group

    # ---- wrapper-side layout plumbing (cheap: ~20 KB total, fused by XLA) ---
    x_pad = jnp.pad(x_ncdhw, ((0, 0), (0, Cin_p - Cin),
                              (pd, pd), (ph, ph), (pw, pw)))
    x_flat = x_pad.reshape(N, Cin_p, P)
    x_flat = jnp.pad(x_flat, ((0, 0), (0, 0), (0, Lx - P)))
    x_flat = x_flat.astype(jnp.bfloat16)                       # (N, Cin_p, Lx)

    # Per-tap weight matrices, tap-major, channels padded to Cin_p.
    w_taps = jnp.transpose(weight_oidhw, (2, 3, 4, 0, 1)).reshape(T, Cout, Cin)
    w_taps = jnp.pad(w_taps, ((0, 0), (0, 0), (0, Cin_p - Cin)))
    w_taps = w_taps.astype(jnp.bfloat16)                        # (T, Cout, Cin_p)
    b_col = bias.reshape(Cout, 1).astype(jnp.float32)

    kernel = functools.partial(_conv3d_tap_kernel,
                               tap_offsets=tap_offsets, out_lanes=L)

    out_flat = pl.pallas_call(
        kernel,
        out_shape=jax.ShapeDtypeStruct((N, Cout, L), x_ncdhw.dtype),
        grid=(N,),
        in_specs=[
            pl.BlockSpec((None, Cin_p, Lx), lambda n: (n, 0, 0)),
            pl.BlockSpec((T, Cout, Cin_p), lambda n: (0, 0, 0)),
            pl.BlockSpec((Cout, 1), lambda n: (0, 0)),
        ],
        out_specs=pl.BlockSpec((None, Cout, L), lambda n: (n, 0, 0)),
        compiler_params=pltpu.CompilerParams(
            dimension_semantics=("parallel",)),
    )(x_flat, w_taps, b_col)

    # Extract the valid output window from the padded-pitch slab
    # (index q = d*Hp*Wp + h*Wp + w) -> (N, Cout, Do, Ho, Wo).
    out = out_flat[:, :, :P].reshape(N, Cout, Dp, Hp, Wp)
    return out[:, :, :Do, :Ho, :Wo]


if __name__ == "__main__":
    # Conv3d config (the kwargs passed to MyM / nn.Conv3d)
    N, Cin, Cout = 2, 4, 8
    D = H = W = 8
    kD = kH = kW = 3
    padding = (1, 1, 1)   # stride = 1

    key = jax.random.PRNGKey(0)
    k_w, k_b, k_x = jax.random.split(key, 3)

    # PyTorch default Conv3d init: U(-1/sqrt(fan_in), 1/sqrt(fan_in))
    fan_in = Cin * kD * kH * kW
    bound = 1.0 / math.sqrt(fan_in)
    weight = jax.random.uniform(k_w, (Cout, Cin, kD, kH, kW), jnp.float32,
                                minval=-bound, maxval=bound)
    bias = jax.random.uniform(k_b, (Cout,), jnp.float32,
                              minval=-bound, maxval=bound)
    x = jax.random.normal(k_x, (N, Cin, D, H, W), jnp.float32)

    out = jax.block_until_ready(conv3d_pallas(x, weight, bias, padding))

    # Reference 1: same bf16 quantization of x / weights (kernel accumulates in f32).
    xq = x.astype(jnp.bfloat16).astype(jnp.float32)
    wq = weight.astype(jnp.bfloat16).astype(jnp.float32)
    ref_q = jax.lax.conv_general_dilated(
        xq, wq, window_strides=(1, 1, 1),
        padding=((1, 1), (1, 1), (1, 1)),
        dimension_numbers=("NCDHW", "OIDHW", "NCDHW"),
    ) + bias.reshape(1, Cout, 1, 1, 1)
    assert out.shape == ref_q.shape, (out.shape, ref_q.shape)
    err_q = float(jnp.max(jnp.abs(out - ref_q)))
    assert err_q < 2e-3, err_q

    # Reference 2: full f32 reference (loose tolerance for the bf16 input cast).
    ref_f32 = jax.lax.conv_general_dilated(
        x, weight, window_strides=(1, 1, 1),
        padding=((1, 1), (1, 1), (1, 1)),
        dimension_numbers=("NCDHW", "OIDHW", "NCDHW"),
    ) + bias.reshape(1, Cout, 1, 1, 1)
    err_f = float(jnp.max(jnp.abs(out - ref_f32)))
    assert err_f < 3e-2, err_f

    print("KERNEL_OK")
</pallas_src>

<mosaic_0001>
module attributes {stable_mosaic.version = 11 : i64} {
  func.func @_conv3d_tap_kernel(%arg0: i32, %arg1: memref<1x8x1280xbf16, #tpu.memory_space<vmem>>, %arg2: memref<27x8x8xbf16, #tpu.memory_space<vmem>>, %arg3: memref<8x1xf32, #tpu.memory_space<vmem>>, %arg4: memref<1x8x1024xf32, #tpu.memory_space<vmem>>) attributes {dimension_semantics = [#tpu.dimension_semantics<parallel>], iteration_bounds = array<i64: 2>, scalar_prefetch = 0 : i64, scratch_operands = 0 : i64, tpu.core_type = #tpu.core_type<tc>, window_params = [{transform_indices = @transform_0, window_bounds = array<i64: 1, 8, 1280>}, {pipeline_mode = #tpu.pipeline_mode<synchronous>, transform_indices = @transform_1, window_bounds = array<i64: 27, 8, 8>}, {pipeline_mode = #tpu.pipeline_mode<synchronous>, transform_indices = @transform_2, window_bounds = array<i64: 8, 1>}, {transform_indices = @transform_3, window_bounds = array<i64: 1, 8, 1024>}]} {
    %c0 = arith.constant 0 : index
    %c0_0 = arith.constant 0 : index
    %0 = vector.load %arg3[%c0, %c0_0] : memref<8x1xf32, #tpu.memory_space<vmem>>, vector<8x1xf32>
    %1 = vector.shape_cast %0 : vector<8x1xf32> to vector<8x1xf32>
    %2 = vector.broadcast %1 : vector<8x1xf32> to vector<8x1024xf32>
    %c0_1 = arith.constant 0 : index
    %c0_2 = arith.constant 0 : index
    %c0_3 = arith.constant 0 : index
    %3 = vector.load %arg1[%c0_1, %c0_2, %c0_3] : memref<1x8x1280xbf16, #tpu.memory_space<vmem>>, vector<1x8x1024xbf16>
    %4 = vector.shape_cast %3 : vector<1x8x1024xbf16> to vector<8x1024xbf16>
    %c0_4 = arith.constant 0 : index
    %c0_5 = arith.constant 0 : index
    %c0_6 = arith.constant 0 : index
    %5 = vector.load %arg2[%c0_4, %c0_5, %c0_6] : memref<27x8x8xbf16, #tpu.memory_space<vmem>>, vector<1x8x8xbf16>
    %6 = vector.shape_cast %5 : vector<1x8x8xbf16> to vector<8x8xbf16>
    %cst = arith.constant dense<0.000000e+00> : vector<8x1024xf32>
    %7 = tpu.matmul %6, %4, %cst {dimension_numbers = #tpu.dot_dimension_numbers<[1], [0], [0], [1], [0, 0, 1, 1], [], []>} : vector<8x8xbf16>, vector<8x1024xbf16>, vector<8x1024xf32> -> vector<8x1024xf32>
    %8 = arith.addf %2, %7 : vector<8x1024xf32>
    %c0_7 = arith.constant 0 : index
    %c0_8 = arith.constant 0 : index
    %c1 = arith.constant 1 : index
    %9 = vector.load %arg1[%c0_7, %c0_8, %c1] : memref<1x8x1280xbf16, #tpu.memory_space<vmem>>, vector<1x8x1024xbf16>
    %10 = vector.shape_cast %9 : vector<1x8x1024xbf16> to vector<8x1024xbf16>
    %c1_9 = arith.constant 1 : index
    %c0_10 = arith.constant 0 : index
    %c0_11 = arith.constant 0 : index
    %11 = vector.load %arg2[%c1_9, %c0_10, %c0_11] : memref<27x8x8xbf16, #tpu.memory_space<vmem>>, vector<1x8x8xbf16>
    %12 = vector.shape_cast %11 : vector<1x8x8xbf16> to vector<8x8xbf16>
    %cst_12 = arith.constant dense<0.000000e+00> : vector<8x1024xf32>
    %13 = tpu.matmul %12, %10, %cst_12 {dimension_numbers = #tpu.dot_dimension_numbers<[1], [0], [0], [1], [0, 0, 1, 1], [], []>} : vector<8x8xbf16>, vector<8x1024xbf16>, vector<8x1024xf32> -> vector<8x1024xf32>
    %14 = arith.addf %8, %13 : vector<8x1024xf32>
    %c0_13 = arith.constant 0 : index
    %c0_14 = arith.constant 0 : index
    %c2 = arith.constant 2 : index
    %15 = vector.load %arg1[%c0_13, %c0_14, %c2] : memref<1x8x1280xbf16, #tpu.memory_space<vmem>>, vector<1x8x1024xbf16>
    %16 = vector.shape_cast %15 : vector<1x8x1024xbf16> to vector<8x1024xbf16>
    %c2_15 = arith.constant 2 : index
    %c0_16 = arith.constant 0 : index
    %c0_17 = arith.constant 0 : index
    %17 = vector.load %arg2[%c2_15, %c0_16, %c0_17] : memref<27x8x8xbf16, #tpu.memory_space<vmem>>, vector<1x8x8xbf16>
    %18 = vector.shape_cast %17 : vector<1x8x8xbf16> to vector<8x8xbf16>
    %cst_18 = arith.constant dense<0.000000e+00> : vector<8x1024xf32>
    %19 = tpu.matmul %18, %16, %cst_18 {dimension_numbers = #tpu.dot_dimension_numbers<[1], [0], [0], [1], [0, 0, 1, 1], [], []>} : vector<8x8xbf16>, vector<8x1024xbf16>, vector<8x1024xf32> -> vector<8x1024xf32>
    %20 = arith.addf %14, %19 : vector<8x1024xf32>
    %c0_19 = arith.constant 0 : index
    %c0_20 = arith.constant 0 : index
    %c10 = arith.constant 10 : index
    %21 = vector.load %arg1[%c0_19, %c0_20, %c10] : memref<1x8x1280xbf16, #tpu.memory_space<vmem>>, vector<1x8x1024xbf16>
    %22 = vector.shape_cast %21 : vector<1x8x1024xbf16> to vector<8x1024xbf16>
    %c3 = arith.constant 3 : index
    %c0_21 = arith.constant 0 : index
    %c0_22 = arith.constant 0 : index
    %23 = vector.load %arg2[%c3, %c0_21, %c0_22] : memref<27x8x8xbf16, #tpu.memory_space<vmem>>, vector<1x8x8xbf16>
    %24 = vector.shape_cast %23 : vector<1x8x8xbf16> to vector<8x8xbf16>
    %cst_23 = arith.constant dense<0.000000e+00> : vector<8x1024xf32>
    %25 = tpu.matmul %24, %22, %cst_23 {dimension_numbers = #tpu.dot_dimension_numbers<[1], [0], [0], [1], [0, 0, 1, 1], [], []>} : vector<8x8xbf16>, vector<8x1024xbf16>, vector<8x1024xf32> -> vector<8x1024xf32>
    %26 = arith.addf %20, %25 : vector<8x1024xf32>
    %c0_24 = arith.constant 0 : index
    %c0_25 = arith.constant 0 : index
    %c11 = arith.constant 11 : index
    %27 = vector.load %arg1[%c0_24, %c0_25, %c11] : memref<1x8x1280xbf16, #tpu.memory_space<vmem>>, vector<1x8x1024xbf16>
    %28 = vector.shape_cast %27 : vector<1x8x1024xbf16> to vector<8x1024xbf16>
    %c4 = arith.constant 4 : index
    %c0_26 = arith.constant 0 : index
    %c0_27 = arith.constant 0 : index
    %29 = vector.load %arg2[%c4, %c0_26, %c0_27] : memref<27x8x8xbf16, #tpu.memory_space<vmem>>, vector<1x8x8xbf16>
    %30 = vector.shape_cast %29 : vector<1x8x8xbf16> to vector<8x8xbf16>
    %cst_28 = arith.constant dense<0.000000e+00> : vector<8x1024xf32>
    %31 = tpu.matmul %30, %28, %cst_28 {dimension_numbers = #tpu.dot_dimension_numbers<[1], [0], [0], [1], [0, 0, 1, 1], [], []>} : vector<8x8xbf16>, vector<8x1024xbf16>, vector<8x1024xf32> -> vector<8x1024xf32>
    %32 = arith.addf %26, %31 : vector<8x1024xf32>
    %c0_29 = arith.constant 0 : index
    %c0_30 = arith.constant 0 : index
    %c12 = arith.constant 12 : index
    %33 = vector.load %arg1[%c0_29, %c0_30, %c12] : memref<1x8x1280xbf16, #tpu.memory_space<vmem>>, vector<1x8x1024xbf16>
    %34 = vector.shape_cast %33 : vector<1x8x1024xbf16> to vector<8x1024xbf16>
    %c5 = arith.constant 5 : index
    %c0_31 = arith.constant 0 : index
    %c0_32 = arith.constant 0 : index
    %35 = vector.load %arg2[%c5, %c0_31, %c0_32] : memref<27x8x8xbf16, #tpu.memory_space<vmem>>, vector<1x8x8xbf16>
    %36 = vector.shape_cast %35 : vector<1x8x8xbf16> to vector<8x8xbf16>
    %cst_33 = arith.constant dense<0.000000e+00> : vector<8x1024xf32>
    %37 = tpu.matmul %36, %34, %cst_33 {dimension_numbers = #tpu.dot_dimension_numbers<[1], [0], [0], [1], [0, 0, 1, 1], [], []>} : vector<8x8xbf16>, vector<8x1024xbf16>, vector<8x1024xf32> -> vector<8x1024xf32>
    %38 = arith.addf %32, %37 : vector<8x1024xf32>
    %c0_34 = arith.constant 0 : index
    %c0_35 = arith.constant 0 : index
    %c20 = arith.constant 20 : index
    %39 = vector.load %arg1[%c0_34, %c0_35, %c20] : memref<1x8x1280xbf16, #tpu.memory_space<vmem>>, vector<1x8x1024xbf16>
    %40 = vector.shape_cast %39 : vector<1x8x1024xbf16> to vector<8x1024xbf16>
    %c6 = arith.constant 6 : index
    %c0_36 = arith.constant 0 : index
    %c0_37 = arith.constant 0 : index
    %41 = vector.load %arg2[%c6, %c0_36, %c0_37] : memref<27x8x8xbf16, #tpu.memory_space<vmem>>, vector<1x8x8xbf16>
    %42 = vector.shape_cast %41 : vector<1x8x8xbf16> to vector<8x8xbf16>
    %cst_38 = arith.constant dense<0.000000e+00> : vector<8x1024xf32>
    %43 = tpu.matmul %42, %40, %cst_38 {dimension_numbers = #tpu.dot_dimension_numbers<[1], [0], [0], [1], [0, 0, 1, 1], [], []>} : vector<8x8xbf16>, vector<8x1024xbf16>, vector<8x1024xf32> -> vector<8x1024xf32>
    %44 = arith.addf %38, %43 : vector<8x1024xf32>
    %c0_39 = arith.constant 0 : index
    %c0_40 = arith.constant 0 : index
    %c21 = arith.constant 21 : index
    %45 = vector.load %arg1[%c0_39, %c0_40, %c21] : memref<1x8x1280xbf16, #tpu.memory_space<vmem>>, vector<1x8x1024xbf16>
    %46 = vector.shape_cast %45 : vector<1x8x1024xbf16> to vector<8x1024xbf16>
    %c7 = arith.constant 7 : index
    %c0_41 = arith.constant 0 : index
    %c0_42 = arith.constant 0 : index
    %47 = vector.load %arg2[%c7, %c0_41, %c0_42] : memref<27x8x8xbf16, #tpu.memory_space<vmem>>, vector<1x8x8xbf16>
    %48 = vector.shape_cast %47 : vector<1x8x8xbf16> to vector<8x8xbf16>
    %cst_43 = arith.constant dense<0.000000e+00> : vector<8x1024xf32>
    %49 = tpu.matmul %48, %46, %cst_43 {dimension_numbers = #tpu.dot_dimension_numbers<[1], [0], [0], [1], [0, 0, 1, 1], [], []>} : vector<8x8xbf16>, vector<8x1024xbf16>, vector<8x1024xf32> -> vector<8x1024xf32>
    %50 = arith.addf %44, %49 : vector<8x1024xf32>
    %c0_44 = arith.constant 0 : index
    %c0_45 = arith.constant 0 : index
    %c22 = arith.constant 22 : index
    %51 = vector.load %arg1[%c0_44, %c0_45, %c22] : memref<1x8x1280xbf16, #tpu.memory_space<vmem>>, vector<1x8x1024xbf16>
    %52 = vector.shape_cast %51 : vector<1x8x1024xbf16> to vector<8x1024xbf16>
    %c8 = arith.constant 8 : index
    %c0_46 = arith.constant 0 : index
    %c0_47 = arith.constant 0 : index
    %53 = vector.load %arg2[%c8, %c0_46, %c0_47] : memref<27x8x8xbf16, #tpu.memory_space<vmem>>, vector<1x8x8xbf16>
    %54 = vector.shape_cast %53 : vector<1x8x8xbf16> to vector<8x8xbf16>
    %cst_48 = arith.constant dense<0.000000e+00> : vector<8x1024xf32>
    %55 = tpu.matmul %54, %52, %cst_48 {dimension_numbers = #tpu.dot_dimension_numbers<[1], [0], [0], [1], [0, 0, 1, 1], [], []>} : vector<8x8xbf16>, vector<8x1024xbf16>, vector<8x1024xf32> -> vector<8x1024xf32>
    %56 = arith.addf %50, %55 : vector<8x1024xf32>
    %c0_49 = arith.constant 0 : index
    %c0_50 = arith.constant 0 : index
    %c100 = arith.constant 100 : index
    %57 = vector.load %arg1[%c0_49, %c0_50, %c100] : memref<1x8x1280xbf16, #tpu.memory_space<vmem>>, vector<1x8x1024xbf16>
    %58 = vector.shape_cast %57 : vector<1x8x1024xbf16> to vector<8x1024xbf16>
    %c9 = arith.constant 9 : index
    %c0_51 = arith.constant 0 : index
    %c0_52 = arith.constant 0 : index
    %59 = vector.load %arg2[%c9, %c0_51, %c0_52] : memref<27x8x8xbf16, #tpu.memory_space<vmem>>, vector<1x8x8xbf16>
    %60 = vector.shape_cast %59 : vector<1x8x8xbf16> to vector<8x8xbf16>
    %cst_53 = arith.constant dense<0.000000e+00> : vector<8x1024xf32>
    %61 = tpu.matmul %60, %58, %cst_53 {dimension_numbers = #tpu.dot_dimension_numbers<[1], [0], [0], [1], [0, 0, 1, 1], [], []>} : vector<8x8xbf16>, vector<8x1024xbf16>, vector<8x1024xf32> -> vector<8x1024xf32>
    %62 = arith.addf %56, %61 : vector<8x1024xf32>
    %c0_54 = arith.constant 0 : index
    %c0_55 = arith.constant 0 : index
    %c101 = arith.constant 101 : index
    %63 = vector.load %arg1[%c0_54, %c0_55, %c101] : memref<1x8x1280xbf16, #tpu.memory_space<vmem>>, vector<1x8x1024xbf16>
    %64 = vector.shape_cast %63 : vector<1x8x1024xbf16> to vector<8x1024xbf16>
    %c10_56 = arith.constant 10 : index
    %c0_57 = arith.constant 0 : index
    %c0_58 = arith.constant 0 : index
    %65 = vector.load %arg2[%c10_56, %c0_57, %c0_58] : memref<27x8x8xbf16, #tpu.memory_space<vmem>>, vector<1x8x8xbf16>
    %66 = vector.shape_cast %65 : vector<1x8x8xbf16> to vector<8x8xbf16>
    %cst_59 = arith.constant dense<0.000000e+00> : vector<8x1024xf32>
    %67 = tpu.matmul %66, %64, %cst_59 {dimension_numbers = #tpu.dot_dimension_numbers<[1], [0], [0], [1], [0, 0, 1, 1], [], []>} : vector<8x8xbf16>, vector<8x1024xbf16>, vector<8x1024xf32> -> vector<8x1024xf32>
    %68 = arith.addf %62, %67 : vector<8x1024xf32>
    %c0_60 = arith.constant 0 : index
    %c0_61 = arith.constant 0 : index
    %c102 = arith.constant 102 : index
    %69 = vector.load %arg1[%c0_60, %c0_61, %c102] : memref<1x8x1280xbf16, #tpu.memory_space<vmem>>, vector<1x8x1024xbf16>
    %70 = vector.shape_cast %69 : vector<1x8x1024xbf16> to vector<8x1024xbf16>
    %c11_62 = arith.constant 11 : index
    %c0_63 = arith.constant 0 : index
    %c0_64 = arith.constant 0 : index
    %71 = vector.load %arg2[%c11_62, %c0_63, %c0_64] : memref<27x8x8xbf16, #tpu.memory_space<vmem>>, vector<1x8x8xbf16>
    %72 = vector.shape_cast %71 : vector<1x8x8xbf16> to vector<8x8xbf16>
    %cst_65 = arith.constant dense<0.000000e+00> : vector<8x1024xf32>
    %73 = tpu.matmul %72, %70, %cst_65 {dimension_numbers = #tpu.dot_dimension_numbers<[1], [0], [0], [1], [0, 0, 1, 1], [], []>} : vector<8x8xbf16>, vector<8x1024xbf16>, vector<8x1024xf32> -> vector<8x1024xf32>
    %74 = arith.addf %68, %73 : vector<8x1024xf32>
    %c0_66 = arith.constant 0 : index
    %c0_67 = arith.constant 0 : index
    %c110 = arith.constant 110 : index
    %75 = vector.load %arg1[%c0_66, %c0_67, %c110] : memref<1x8x1280xbf16, #tpu.memory_space<vmem>>, vector<1x8x1024xbf16>
    %76 = vector.shape_cast %75 : vector<1x8x1024xbf16> to vector<8x1024xbf16>
    %c12_68 = arith.constant 12 : index
    %c0_69 = arith.constant 0 : index
    %c0_70 = arith.constant 0 : index
    %77 = vector.load %arg2[%c12_68, %c0_69, %c0_70] : memref<27x8x8xbf16, #tpu.memory_space<vmem>>, vector<1x8x8xbf16>
    %78 = vector.shape_cast %77 : vector<1x8x8xbf16> to vector<8x8xbf16>
    %cst_71 = arith.constant dense<0.000000e+00> : vector<8x1024xf32>
    %79 = tpu.matmul %78, %76, %cst_71 {dimension_numbers = #tpu.dot_dimension_numbers<[1], [0], [0], [1], [0, 0, 1, 1], [], []>} : vector<8x8xbf16>, vector<8x1024xbf16>, vector<8x1024xf32> -> vector<8x1024xf32>
    %80 = arith.addf %74, %79 : vector<8x1024xf32>
    %c0_72 = arith.constant 0 : index
    %c0_73 = arith.constant 0 : index
    %c111 = arith.constant 111 : index
    %81 = vector.load %arg1[%c0_72, %c0_73, %c111] : memref<1x8x1280xbf16, #tpu.memory_space<vmem>>, vector<1x8x1024xbf16>
    %82 = vector.shape_cast %81 : vector<1x8x1024xbf16> to vector<8x1024xbf16>
    %c13 = arith.constant 13 : index
    %c0_74 = arith.constant 0 : index
    %c0_75 = arith.constant 0 : index
    %83 = vector.load %arg2[%c13, %c0_74, %c0_75] : memref<27x8x8xbf16, #tpu.memory_space<vmem>>, vector<1x8x8xbf16>
    %84 = vector.shape_cast %83 : vector<1x8x8xbf16> to vector<8x8xbf16>
    %cst_76 = arith.constant dense<0.000000e+00> : vector<8x1024xf32>
    %85 = tpu.matmul %84, %82, %cst_76 {dimension_numbers = #tpu.dot_dimension_numbers<[1], [0], [0], [1], [0, 0, 1, 1], [], []>} : vector<8x8xbf16>, vector<8x1024xbf16>, vector<8x1024xf32> -> vector<8x1024xf32>
    %86 = arith.addf %80, %85 : vector<8x1024xf32>
    %c0_77 = arith.constant 0 : index
    %c0_78 = arith.constant 0 : index
    %c112 = arith.constant 112 : index
    %87 = vector.load %arg1[%c0_77, %c0_78, %c112] : memref<1x8x1280xbf16, #tpu.memory_space<vmem>>, vector<1x8x1024xbf16>
    %88 = vector.shape_cast %87 : vector<1x8x1024xbf16> to vector<8x1024xbf16>
    %c14 = arith.constant 14 : index
    %c0_79 = arith.constant 0 : index
    %c0_80 = arith.constant 0 : index
    %89 = vector.load %arg2[%c14, %c0_79, %c0_80] : memref<27x8x8xbf16, #tpu.memory_space<vmem>>, vector<1x8x8xbf16>
    %90 = vector.shape_cast %89 : vector<1x8x8xbf16> to vector<8x8xbf16>
    %cst_81 = arith.constant dense<0.000000e+00> : vector<8x1024xf32>
    %91 = tpu.matmul %90, %88, %cst_81 {dimension_numbers = #tpu.dot_dimension_numbers<[1], [0], [0], [1], [0, 0, 1, 1], [], []>} : vector<8x8xbf16>, vector<8x1024xbf16>, vector<8x1024xf32> -> vector<8x1024xf32>
    %92 = arith.addf %86, %91 : vector<8x1024xf32>
    %c0_82 = arith.constant 0 : index
    %c0_83 = arith.constant 0 : index
    %c120 = arith.constant 120 : index
    %93 = vector.load %arg1[%c0_82, %c0_83, %c120] : memref<1x8x1280xbf16, #tpu.memory_space<vmem>>, vector<1x8x1024xbf16>
    %94 = vector.shape_cast %93 : vector<1x8x1024xbf16> to vector<8x1024xbf16>
    %c15 = arith.constant 15 : index
    %c0_84 = arith.constant 0 : index
    %c0_85 = arith.constant 0 : index
    %95 = vector.load %arg2[%c15, %c0_84, %c0_85] : memref<27x8x8xbf16, #tpu.memory_space<vmem>>, vector<1x8x8xbf16>
    %96 = vector.shape_cast %95 : vector<1x8x8xbf16> to vector<8x8xbf16>
    %cst_86 = arith.constant dense<0.000000e+00> : vector<8x1024xf32>
    %97 = tpu.matmul %96, %94, %cst_86 {dimension_numbers = #tpu.dot_dimension_numbers<[1], [0], [0], [1], [0, 0, 1, 1], [], []>} : vector<8x8xbf16>, vector<8x1024xbf16>, vector<8x1024xf32> -> vector<8x1024xf32>
    %98 = arith.addf %92, %97 : vector<8x1024xf32>
    %c0_87 = arith.constant 0 : index
    %c0_88 = arith.constant 0 : index
    %c121 = arith.constant 121 : index
    %99 = vector.load %arg1[%c0_87, %c0_88, %c121] : memref<1x8x1280xbf16, #tpu.memory_space<vmem>>, vector<1x8x1024xbf16>
    %100 = vector.shape_cast %99 : vector<1x8x1024xbf16> to vector<8x1024xbf16>
    %c16 = arith.constant 16 : index
    %c0_89 = arith.constant 0 : index
    %c0_90 = arith.constant 0 : index
    %101 = vector.load %arg2[%c16, %c0_89, %c0_90] : memref<27x8x8xbf16, #tpu.memory_space<vmem>>, vector<1x8x8xbf16>
    %102 = vector.shape_cast %101 : vector<1x8x8xbf16> to vector<8x8xbf16>
    %cst_91 = arith.constant dense<0.000000e+00> : vector<8x1024xf32>
    %103 = tpu.matmul %102, %100, %cst_91 {dimension_numbers = #tpu.dot_dimension_numbers<[1], [0], [0], [1], [0, 0, 1, 1], [], []>} : vector<8x8xbf16>, vector<8x1024xbf16>, vector<8x1024xf32> -> vector<8x1024xf32>
    %104 = arith.addf %98, %103 : vector<8x1024xf32>
    %c0_92 = arith.constant 0 : index
    %c0_93 = arith.constant 0 : index
    %c122 = arith.constant 122 : index
    %105 = vector.load %arg1[%c0_92, %c0_93, %c122] : memref<1x8x1280xbf16, #tpu.memory_space<vmem>>, vector<1x8x1024xbf16>
    %106 = vector.shape_cast %105 : vector<1x8x1024xbf16> to vector<8x1024xbf16>
    %c17 = arith.constant 17 : index
    %c0_94 = arith.constant 0 : index
    %c0_95 = arith.constant 0 : index
    %107 = vector.load %arg2[%c17, %c0_94, %c0_95] : memref<27x8x8xbf16, #tpu.memory_space<vmem>>, vector<1x8x8xbf16>
    %108 = vector.shape_cast %107 : vector<1x8x8xbf16> to vector<8x8xbf16>
    %cst_96 = arith.constant dense<0.000000e+00> : vector<8x1024xf32>
    %109 = tpu.matmul %108, %106, %cst_96 {dimension_numbers = #tpu.dot_dimension_numbers<[1], [0], [0], [1], [0, 0, 1, 1], [], []>} : vector<8x8xbf16>, vector<8x1024xbf16>, vector<8x1024xf32> -> vector<8x1024xf32>
    %110 = arith.addf %104, %109 : vector<8x1024xf32>
    %c0_97 = arith.constant 0 : index
    %c0_98 = arith.constant 0 : index
    %c200 = arith.constant 200 : index
    %111 = vector.load %arg1[%c0_97, %c0_98, %c200] : memref<1x8x1280xbf16, #tpu.memory_space<vmem>>, vector<1x8x1024xbf16>
    %112 = vector.shape_cast %111 : vector<1x8x1024xbf16> to vector<8x1024xbf16>
    %c18 = arith.constant 18 : index
    %c0_99 = arith.constant 0 : index
    %c0_100 = arith.constant 0 : index
    %113 = vector.load %arg2[%c18, %c0_99, %c0_100] : memref<27x8x8xbf16, #tpu.memory_space<vmem>>, vector<1x8x8xbf16>
    %114 = vector.shape_cast %113 : vector<1x8x8xbf16> to vector<8x8xbf16>
    %cst_101 = arith.constant dense<0.000000e+00> : vector<8x1024xf32>
    %115 = tpu.matmul %114, %112, %cst_101 {dimension_numbers = #tpu.dot_dimension_numbers<[1], [0], [0], [1], [0, 0, 1, 1], [], []>} : vector<8x8xbf16>, vector<8x1024xbf16>, vector<8x1024xf32> -> vector<8x1024xf32>
    %116 = arith.addf %110, %115 : vector<8x1024xf32>
    %c0_102 = arith.constant 0 : index
    %c0_103 = arith.constant 0 : index
    %c201 = arith.constant 201 : index
    %117 = vector.load %arg1[%c0_102, %c0_103, %c201] : memref<1x8x1280xbf16, #tpu.memory_space<vmem>>, vector<1x8x1024xbf16>
    %118 = vector.shape_cast %117 : vector<1x8x1024xbf16> to vector<8x1024xbf16>
    %c19 = arith.constant 19 : index
    %c0_104 = arith.constant 0 : index
    %c0_105 = arith.constant 0 : index
    %119 = vector.load %arg2[%c19, %c0_104, %c0_105] : memref<27x8x8xbf16, #tpu.memory_space<vmem>>, vector<1x8x8xbf16>
    %120 = vector.shape_cast %119 : vector<1x8x8xbf16> to vector<8x8xbf16>
    %cst_106 = arith.constant dense<0.000000e+00> : vector<8x1024xf32>
    %121 = tpu.matmul %120, %118, %cst_106 {dimension_numbers = #tpu.dot_dimension_numbers<[1], [0], [0], [1], [0, 0, 1, 1], [], []>} : vector<8x8xbf16>, vector<8x1024xbf16>, vector<8x1024xf32> -> vector<8x1024xf32>
    %122 = arith.addf %116, %121 : vector<8x1024xf32>
    %c0_107 = arith.constant 0 : index
    %c0_108 = arith.constant 0 : index
    %c202 = arith.constant 202 : index
    %123 = vector.load %arg1[%c0_107, %c0_108, %c202] : memref<1x8x1280xbf16, #tpu.memory_space<vmem>>, vector<1x8x1024xbf16>
    %124 = vector.shape_cast %123 : vector<1x8x1024xbf16> to vector<8x1024xbf16>
    %c20_109 = arith.constant 20 : index
    %c0_110 = arith.constant 0 : index
    %c0_111 = arith.constant 0 : index
    %125 = vector.load %arg2[%c20_109, %c0_110, %c0_111] : memref<27x8x8xbf16, #tpu.memory_space<vmem>>, vector<1x8x8xbf16>
    %126 = vector.shape_cast %125 : vector<1x8x8xbf16> to vector<8x8xbf16>
    %cst_112 = arith.constant dense<0.000000e+00> : vector<8x1024xf32>
    %127 = tpu.matmul %126, %124, %cst_112 {dimension_numbers = #tpu.dot_dimension_numbers<[1], [0], [0], [1], [0, 0, 1, 1], [], []>} : vector<8x8xbf16>, vector<8x1024xbf16>, vector<8x1024xf32> -> vector<8x1024xf32>
    %128 = arith.addf %122, %127 : vector<8x1024xf32>
    %c0_113 = arith.constant 0 : index
    %c0_114 = arith.constant 0 : index
    %c210 = arith.constant 210 : index
    %129 = vector.load %arg1[%c0_113, %c0_114, %c210] : memref<1x8x1280xbf16, #tpu.memory_space<vmem>>, vector<1x8x1024xbf16>
    %130 = vector.shape_cast %129 : vector<1x8x1024xbf16> to vector<8x1024xbf16>
    %c21_115 = arith.constant 21 : index
    %c0_116 = arith.constant 0 : index
    %c0_117 = arith.constant 0 : index
    %131 = vector.load %arg2[%c21_115, %c0_116, %c0_117] : memref<27x8x8xbf16, #tpu.memory_space<vmem>>, vector<1x8x8xbf16>
    %132 = vector.shape_cast %131 : vector<1x8x8xbf16> to vector<8x8xbf16>
    %cst_118 = arith.constant dense<0.000000e+00> : vector<8x1024xf32>
    %133 = tpu.matmul %132, %130, %cst_118 {dimension_numbers = #tpu.dot_dimension_numbers<[1], [0], [0], [1], [0, 0, 1, 1], [], []>} : vector<8x8xbf16>, vector<8x1024xbf16>, vector<8x1024xf32> -> vector<8x1024xf32>
    %134 = arith.addf %128, %133 : vector<8x1024xf32>
    %c0_119 = arith.constant 0 : index
    %c0_120 = arith.constant 0 : index
    %c211 = arith.constant 211 : index
    %135 = vector.load %arg1[%c0_119, %c0_120, %c211] : memref<1x8x1280xbf16, #tpu.memory_space<vmem>>, vector<1x8x1024xbf16>
    %136 = vector.shape_cast %135 : vector<1x8x1024xbf16> to vector<8x1024xbf16>
    %c22_121 = arith.constant 22 : index
    %c0_122 = arith.constant 0 : index
    %c0_123 = arith.constant 0 : index
    %137 = vector.load %arg2[%c22_121, %c0_122, %c0_123] : memref<27x8x8xbf16, #tpu.memory_space<vmem>>, vector<1x8x8xbf16>
    %138 = vector.shape_cast %137 : vector<1x8x8xbf16> to vector<8x8xbf16>
    %cst_124 = arith.constant dense<0.000000e+00> : vector<8x1024xf32>
    %139 = tpu.matmul %138, %136, %cst_124 {dimension_numbers = #tpu.dot_dimension_numbers<[1], [0], [0], [1], [0, 0, 1, 1], [], []>} : vector<8x8xbf16>, vector<8x1024xbf16>, vector<8x1024xf32> -> vector<8x1024xf32>
    %140 = arith.addf %134, %139 : vector<8x1024xf32>
    %c0_125 = arith.constant 0 : index
    %c0_126 = arith.constant 0 : index
    %c212 = arith.constant 212 : index
    %141 = vector.load %arg1[%c0_125, %c0_126, %c212] : memref<1x8x1280xbf16, #tpu.memory_space<vmem>>, vector<1x8x1024xbf16>
    %142 = vector.shape_cast %141 : vector<1x8x1024xbf16> to vector<8x1024xbf16>
    %c23 = arith.constant 23 : index
    %c0_127 = arith.constant 0 : index
    %c0_128 = arith.constant 0 : index
    %143 = vector.load %arg2[%c23, %c0_127, %c0_128] : memref<27x8x8xbf16, #tpu.memory_space<vmem>>, vector<1x8x8xbf16>
    %144 = vector.shape_cast %143 : vector<1x8x8xbf16> to vector<8x8xbf16>
    %cst_129 = arith.constant dense<0.000000e+00> : vector<8x1024xf32>
    %145 = tpu.matmul %144, %142, %cst_129 {dimension_numbers = #tpu.dot_dimension_numbers<[1], [0], [0], [1], [0, 0, 1, 1], [], []>} : vector<8x8xbf16>, vector<8x1024xbf16>, vector<8x1024xf32> -> vector<8x1024xf32>
    %146 = arith.addf %140, %145 : vector<8x1024xf32>
    %c0_130 = arith.constant 0 : index
    %c0_131 = arith.constant 0 : index
    %c220 = arith.constant 220 : index
    %147 = vector.load %arg1[%c0_130, %c0_131, %c220] : memref<1x8x1280xbf16, #tpu.memory_space<vmem>>, vector<1x8x1024xbf16>
    %148 = vector.shape_cast %147 : vector<1x8x1024xbf16> to vector<8x1024xbf16>
    %c24 = arith.constant 24 : index
    %c0_132 = arith.constant 0 : index
    %c0_133 = arith.constant 0 : index
    %149 = vector.load %arg2[%c24, %c0_132, %c0_133] : memref<27x8x8xbf16, #tpu.memory_space<vmem>>, vector<1x8x8xbf16>
    %150 = vector.shape_cast %149 : vector<1x8x8xbf16> to vector<8x8xbf16>
    %cst_134 = arith.constant dense<0.000000e+00> : vector<8x1024xf32>
    %151 = tpu.matmul %150, %148, %cst_134 {dimension_numbers = #tpu.dot_dimension_numbers<[1], [0], [0], [1], [0, 0, 1, 1], [], []>} : vector<8x8xbf16>, vector<8x1024xbf16>, vector<8x1024xf32> -> vector<8x1024xf32>
    %152 = arith.addf %146, %151 : vector<8x1024xf32>
    %c0_135 = arith.constant 0 : index
    %c0_136 = arith.constant 0 : index
    %c221 = arith.constant 221 : index
    %153 = vector.load %arg1[%c0_135, %c0_136, %c221] : memref<1x8x1280xbf16, #tpu.memory_space<vmem>>, vector<1x8x1024xbf16>
    %154 = vector.shape_cast %153 : vector<1x8x1024xbf16> to vector<8x1024xbf16>
    %c25 = arith.constant 25 : index
    %c0_137 = arith.constant 0 : index
    %c0_138 = arith.constant 0 : index
    %155 = vector.load %arg2[%c25, %c0_137, %c0_138] : memref<27x8x8xbf16, #tpu.memory_space<vmem>>, vector<1x8x8xbf16>
    %156 = vector.shape_cast %155 : vector<1x8x8xbf16> to vector<8x8xbf16>
    %cst_139 = arith.constant dense<0.000000e+00> : vector<8x1024xf32>
    %157 = tpu.matmul %156, %154, %cst_139 {dimension_numbers = #tpu.dot_dimension_numbers<[1], [0], [0], [1], [0, 0, 1, 1], [], []>} : vector<8x8xbf16>, vector<8x1024xbf16>, vector<8x1024xf32> -> vector<8x1024xf32>
    %158 = arith.addf %152, %157 : vector<8x1024xf32>
    %c0_140 = arith.constant 0 : index
    %c0_141 = arith.constant 0 : index
    %c222 = arith.constant 222 : index
    %159 = vector.load %arg1[%c0_140, %c0_141, %c222] : memref<1x8x1280xbf16, #tpu.memory_space<vmem>>, vector<1x8x1024xbf16>
    %160 = vector.shape_cast %159 : vector<1x8x1024xbf16> to vector<8x1024xbf16>
    %c26 = arith.constant 26 : index
    %c0_142 = arith.constant 0 : index
    %c0_143 = arith.constant 0 : index
    %161 = vector.load %arg2[%c26, %c0_142, %c0_143] : memref<27x8x8xbf16, #tpu.memory_space<vmem>>, vector<1x8x8xbf16>
    %162 = vector.shape_cast %161 : vector<1x8x8xbf16> to vector<8x8xbf16>
    %cst_144 = arith.constant dense<0.000000e+00> : vector<8x1024xf32>
    %163 = tpu.matmul %162, %160, %cst_144 {dimension_numbers = #tpu.dot_dimension_numbers<[1], [0], [0], [1], [0, 0, 1, 1], [], []>} : vector<8x8xbf16>, vector<8x1024xbf16>, vector<8x1024xf32> -> vector<8x1024xf32>
    %164 = arith.addf %158, %163 : vector<8x1024xf32>
    %c0_145 = arith.constant 0 : index
    %c0_146 = arith.constant 0 : index
    %c0_147 = arith.constant 0 : index
    %165 = vector.load %arg4[%c0_145, %c0_146, %c0_147] : memref<1x8x1024xf32, #tpu.memory_space<vmem>>, vector<1x8x1024xf32>
    %166 = vector.shape_cast %165 : vector<1x8x1024xf32> to vector<8x1024xf32>
    %167 = vector.shape_cast %164 : vector<8x1024xf32> to vector<1x8x1024xf32>
    tpu.vector_store %arg4[%c0_145, %c0_146, %c0_147], %167 {strides = array<i32>} : memref<1x8x1024xf32, #tpu.memory_space<vmem>>, vector<1x8x1024xf32>,
    return
  }
  func.func @transform_0(%arg0: i32) -> (i32, i32, i32) {
    %c0_i32 = arith.constant 0 : i32
    %c0_i32_0 = arith.constant 0 : i32
    %c0_i32_1 = arith.constant 0 : i32
    return %arg0, %c0_i32, %c0_i32_0 : i32, i32, i32
  }
  func.func @transform_1(%arg0: i32) -> (i32, i32, i32) {
    %c0_i32 = arith.constant 0 : i32
    %c0_i32_0 = arith.constant 0 : i32
    %c0_i32_1 = arith.constant 0 : i32
    %c0_i32_2 = arith.constant 0 : i32
    return %c0_i32, %c0_i32_0, %c0_i32_1 : i32, i32, i32
  }
  func.func @transform_2(%arg0: i32) -> (i32, i32) {
    %c0_i32 = arith.constant 0 : i32
    %c0_i32_0 = arith.constant 0 : i32
    %c0_i32_1 = arith.constant 0 : i32
    return %c0_i32, %c0_i32_0 : i32, i32
  }
  func.func @transform_3(%arg0: i32) -> (i32, i32, i32) {
    %c0_i32 = arith.constant 0 : i32
    %c0_i32_0 = arith.constant 0 : i32
    %c0_i32_1 = arith.constant 0 : i32
    return %arg0, %c0_i32, %c0_i32_0 : i32, i32, i32
  }
}

</mosaic_0001>

<bundles_post_ra>
// kernel: conv3d_pallas.1
= control target key start
LH: loop header
LB: loop body
LE: loop exit
PB: predicated region body
PF: predicated region fallthrough
CT: control target
= control target key end

     0   :  { %s7265_s12 = smov 0   ;;  %s8490_s0 = inlined_call_operand.vmem [shape: bf16[2,8,1280], index: 0, kind: input, shape index: {}]   ;;  %s8491_s1 = inlined_call_operand.vmem [shape: bf16[27,8,8], index: 1, kind: input, shape index: {}]   ;;  %s8492_s2 = inlined_call_operand.vmem [shape: f32[8,1], index: 2, kind: input, shape index: {}]   ;;  %s8493_s3 = inlined_call_operand.vmem [shape: f32[2,8,1024], index: 3, kind: output, shape index: {}]  }
   0x1 LB: > { %s6451_s13 = sadd.s32 4294967295, %s7216_s12   ;;  %p6455_p0 = scmp.ge.s32.totalorder %s7216_s12, 1  ;;  %s7216_s12 = sphi %s7265_s12, %s13_s12  }
   0x2   : > { %p137_p1 = scmp.lt.s32.totalorder %s7216_s12, 3 }
   0x4   : > { %p138_p2 = pnand %p6455_p0, %p137_p1 }
   0x5   : > { %p161_p3 = scmp.lt.s32.totalorder (!%p138_p2), %s6451_s13, 1  ;;  %v7218_v0 = vmov (!%p138_p2), 0   ;;  %vm207_vm0 = vcmask (!%p138_p2), 1043456   ;;  %s7219_s18 = smov (!%p138_p2), 127   ;;  %v182_v15 = vld [vmem:[%s8491_s1] sm:$0xf] (!%p138_p2) }
   0x6   : > { %141 = sbr.rel (%p138_p2) target bundleno = 820 (0x334), region = 32  ;;  %264 = vmatprep.mubr.bf16.mxu0 (!%p138_p2), %v7218_v0  ;;  %305 = vmatprep.mubr.bf16.mxu1 (!%p138_p2), %v7218_v0  ;;  %vm203_vm1 = vcmask (!%p138_p2), 64512   ;;  %s7220_s21 = smov (!%p138_p2), 126   ;;  %vm452_vm2 = vcmask (!%p138_p2), 1039360   ;;  %v6475_v29 = vld [vmem:[%s8491_s1 + $0x4] sm:$0xf] (!%p138_p2) }
   0x7   : > { %7190 = vset.pattern.permute.xlu0 (!%p138_p2), %v7218_v0  ;;  %s7221_s22 = smov (!%p138_p2), 118   ;;  %s7222_s23 = smov (!%p138_p2), 117   ;;  %vm680_vm3 = vcmask (!%p138_p2), 1031168   ;;  %v6493_v49 = vld [vmem:[%s8491_s1 + $0x8] sm:$0xf] (!%p138_p2)  ;;  %vm908_vm4 = vcmask (!%p138_p2), 965632  }
   0x8   : > { %s7223_s24 = smov (!%p138_p2), 116   ;;  %s7224_s25 = smov (!%p138_p2), 108   ;;  %vm1136_vm5 = vcmask (!%p138_p2), 957440   ;;  %vm1364_vm6 = vcmask (!%p138_p2), 949248   ;;  %vm1592_vm7 = vcmask (!%p138_p2), 883712   ;;  %vm1820_vm8 = vcmask (!%p138_p2), 875520  }
   0x9   : > { %s7225_s26 = smov (!%p138_p2), 107   ;;  %s7226_s29 = smov (!%p138_p2), 106   ;;  %vm2048_vm9 = vcmask (!%p138_p2), 867328   ;;  %vm2276_vm10 = vcmask (!%p138_p2), 228352   ;;  %vm2504_vm11 = vcmask (!%p138_p2), 220160   ;;  %vm2732_vm12 = vcmask (!%p138_p2), 211968  }
   0xa   : > { %s7227_s5 = smov (!%p138_p2), 28   ;;  %s7228_s8 = smov (!%p138_p2), 27   ;;  %vm2960_vm13 = vcmask (!%p138_p2), 146432   ;;  %vm3188_vm14 = vcmask (!%p138_p2), 138240   ;;  %vm3416_vm15 = vcmask (!%p138_p2), 130048  }
   0xb   : > { %s7229_s11 = smov (!%p138_p2), 26   ;;  %s7230_s16 = smov (!%p138_p2), 18  }
   0xc   : > { %s7231_s20 = smov (!%p138_p2), 17   ;;  %s7238_s15 = smov (!%p138_p2), 54  }
   0xd   : > { %s8495_s13 = smov (!%p161_p3, %s6451_s13), 1  ;;  %s7239_s19 = smov 46  }
   0xe   : > { %s7154_s14 = smul.u32 40, %s8495_s13  ;;  %s7242_s28 = smov 36  }
   0xf   : > { %s7243_s4 = smov 35   ;;  %s7244_s7 = smov 34  }
  0x10   : > { %s7282_s17 = scalar_lea.vmem %s8490_s0, %s7154_s14 }
  0x11   : > { %v405_v1 = vld [vmem:[%s7282_s17 + $0x8] sm:$0xff]  ;;  %v404_v2 = vld [vmem:[%s7282_s17] sm:$0xff]  ;;  %v406_v5 = vld [vmem:[%s7282_s17 + $0x10] sm:$0xff] }
  0x12   : > { %v7286_v3 = vcombine.low %v405_v1, %v405_v1  ;;  %v7288_v4 = vcombine.low %v404_v2, %v404_v2  ;;  %v407_v6 = vld [vmem:[%s7282_s17 + $0x18] sm:$0xff]  ;;  %v7292_v7 = vcombine.high %v405_v1, %v405_v1  ;;  %v7294_v8 = vcombine.high %v404_v2, %v404_v2  ;;  %v7344_v18 = vld [vmem:[%s7282_s17 + $0x20] ss:$0 sps:$4 sm:$0xff]  }
  0x13   : > { %v7304_v11 = vcombine.high %v406_v5, %v406_v5  ;;  %v7306_v12 = vcombine.low %v406_v5, %v406_v5  ;;  %v7308_v13 = vcombine.high %v407_v6, %v407_v6  ;;  %v7314_v14 = vcombine.low %v407_v6, %v407_v6 }
  0x14   : > { %438 = vrot.lane.b32.xlu1 %v7286_v3, %s7219_s18  ;;  %434 = vrot.lane.b32.xlu0 %v7288_v4, %s7219_s18  ;;  %v209_v9 = vsel %vm207_vm0, %v7288_v4, 0  ;;  %v215_v10 = vsel %vm207_vm0, %v7286_v3, 0 }
  0x15   : > { %6467 = vmatprep.subr.msk.bf16.mxu0 %vm207_vm0, %v7294_v8  ;;  %6469 = vmatprep.subr.msk.bf16.mxu1 %vm207_vm0, %v7292_v7  ;;  %v221_v16 = vsel %vm207_vm0, %v7306_v12, 0  ;;  %v227_v17 = vsel %vm207_vm0, %v7314_v14, 0 }
  0x16   : > { %233 = vmatpush1.bf16.msra.mxu0 %v209_v9  ;;  %274 = vmatpush1.bf16.msra.mxu1 %v215_v10 }
  0x17   : > { %6471 = vmatprep.subr.msk.bf16.mxu0 %vm207_vm0, %v7304_v11  ;;  %6473 = vmatprep.subr.msk.bf16.mxu1 %vm207_vm0, %v7308_v13 }
  0x18   : > { %440 = vrot.lane.b32.xlu1 %v7292_v7, %s7219_s18  ;;  %436 = vrot.lane.b32.xlu0 %v7294_v8, %s7219_s18 }
  0x19   : > { %6468 = vmatmul.mubr.msk.bf16.vlgmr.msra.gmra.mrb[0].mxu0 %vm203_vm1, %v182_v15  ;;  %6470 = vmatmul.mubr.msk.bf16.vlgmr.msra.gmra.mrb[0].mxu1 %vm203_vm1, %v182_v15 }
  0x1a   : > { %315 = vmatpush1.bf16.msra.mxu0 %v221_v16  ;;  %346 = vmatprep.mubr.bf16.mxu0 %v7218_v0 }
  0x1b   : > { %356 = vmatpush1.bf16.msra.mxu1 %v227_v17  ;;  %387 = vmatprep.mubr.bf16.mxu1 %v7218_v0 }
  0x1c   : > { %444 = vrot.lane.b32.xlu1 %v7304_v11, %s7219_s18  ;;  %442 = vrot.lane.b32.xlu0 %v7306_v12, %s7219_s18 }
  0x20   : > { %448 = vrot.lane.b32.xlu1 %v7308_v13, %s7219_s18  ;;  %446 = vrot.lane.b32.xlu0 %v7314_v14, %s7219_s18 }
  0x21   : > { %6472 = vmatmul.mubr.msk.bf16.vlgmr.msra.gmra.mrb[4].mxu0 %vm203_vm1, %v182_v15  ;;  %6474 = vmatmul.mubr.msk.bf16.vlgmr.msra.gmra.mrb[4].mxu1 %vm203_vm1, %v182_v15 }
  0x22   : > { %520 = vmatprep.mubr.bf16.mxu0 %v7218_v0  ;;  %561 = vmatprep.mubr.bf16.mxu1 %v7218_v0 }
  0x24   : > { %662 = vrot.lane.b32.xlu1 %v7288_v4, %s7220_s21  ;;  %450 = vrot.lane.b32.xlu0 %v7344_v18, %s7219_s18 }
  0x28   : > { %666 = vrot.lane.b32.xlu1 %v7286_v3, %s7220_s21  ;;  %664 = vrot.lane.b32.xlu0 %v7294_v8, %s7220_s21 }
  0x2c   : > { %670 = vrot.lane.b32.xlu1 %v7306_v12, %s7220_s21  ;;  %668 = vrot.lane.b32.xlu0 %v7292_v7, %s7220_s21 }
  0x30   : > { %674 = vrot.lane.b32.xlu1 %v7314_v14, %s7220_s21  ;;  %672 = vrot.lane.b32.xlu0 %v7304_v11, %s7220_s21 }
  0x34   : > { %678 = vrot.lane.b32.xlu1 %v7344_v18, %s7220_s21  ;;  %676 = vrot.lane.b32.xlu0 %v7308_v13, %s7220_s21 }
  0x38   : > { %892 = vrot.lane.b32.xlu1 %v7294_v8, %s7221_s22  ;;  %890 = vrot.lane.b32.xlu0 %v7288_v4, %s7221_s22 }
  0x3c   : > { %896 = vrot.lane.b32.xlu1 %v7292_v7, %s7221_s22  ;;  %894 = vrot.lane.b32.xlu0 %v7286_v3, %s7221_s22 }
  0x40   : > { %900 = vrot.lane.b32.xlu1 %v7304_v11, %s7221_s22  ;;  %898 = vrot.lane.b32.xlu0 %v7306_v12, %s7221_s22 }
  0x44   : > { %904 = vrot.lane.b32.xlu1 %v7308_v13, %s7221_s22  ;;  %902 = vrot.lane.b32.xlu0 %v7314_v14, %s7221_s22 }
  0x48   : > { %1118 = vrot.lane.b32.xlu1 %v7288_v4, %s7222_s23  ;;  %906 = vrot.lane.b32.xlu0 %v7344_v18, %s7221_s22  ;;  %s7240_s22 = smov 45  }
  0x4c   : > { %1122 = vrot.lane.b32.xlu1 %v7286_v3, %s7222_s23  ;;  %1120 = vrot.lane.b32.xlu0 %v7294_v8, %s7222_s23 }
  0x50   : > { %1126 = vrot.lane.b32.xlu1 %v7306_v12, %s7222_s23  ;;  %1124 = vrot.lane.b32.xlu0 %v7292_v7, %s7222_s23 }
  0x54   : > { %1130 = vrot.lane.b32.xlu1 %v7314_v14, %s7222_s23  ;;  %1128 = vrot.lane.b32.xlu0 %v7304_v11, %s7222_s23 }
  0x58   : > { %1134 = vrot.lane.b32.xlu1 %v7344_v18, %s7222_s23  ;;  %1132 = vrot.lane.b32.xlu0 %v7308_v13, %s7222_s23  ;;  %s7232_s23 = smov 16  }
  0x5c   : > { %1348 = vrot.lane.b32.xlu1 %v7294_v8, %s7223_s24  ;;  %1346 = vrot.lane.b32.xlu0 %v7288_v4, %s7223_s24 }
  0x60   : > { %1352 = vrot.lane.b32.xlu1 %v7292_v7, %s7223_s24  ;;  %1350 = vrot.lane.b32.xlu0 %v7286_v3, %s7223_s24 }
  0x64   : > { %1356 = vrot.lane.b32.xlu1 %v7304_v11, %s7223_s24  ;;  %1354 = vrot.lane.b32.xlu0 %v7306_v12, %s7223_s24 }
  0x68   : > { %1360 = vrot.lane.b32.xlu1 %v7308_v13, %s7223_s24  ;;  %1358 = vrot.lane.b32.xlu0 %v7314_v14, %s7223_s24 }
  0x6c   : > { %1574 = vrot.lane.b32.xlu1 %v7288_v4, %s7224_s25  ;;  %1362 = vrot.lane.b32.xlu0 %v7344_v18, %s7223_s24 }
  0x70   : > { %1578 = vrot.lane.b32.xlu1 %v7286_v3, %s7224_s25  ;;  %1576 = vrot.lane.b32.xlu0 %v7294_v8, %s7224_s25 }
  0x74   : > { %1582 = vrot.lane.b32.xlu1 %v7306_v12, %s7224_s25  ;;  %1580 = vrot.lane.b32.xlu0 %v7292_v7, %s7224_s25 }
  0x78   : > { %1586 = vrot.lane.b32.xlu1 %v7314_v14, %s7224_s25  ;;  %1584 = vrot.lane.b32.xlu0 %v7304_v11, %s7224_s25 }
  0x7c   : > { %1590 = vrot.lane.b32.xlu1 %v7344_v18, %s7224_s25  ;;  %1588 = vrot.lane.b32.xlu0 %v7308_v13, %s7224_s25  ;;  %s7241_s25 = smov 44  }
  0x80   : > { %1804 = vrot.lane.b32.xlu1 %v7294_v8, %s7225_s26  ;;  %1802 = vrot.lane.b32.xlu0 %v7288_v4, %s7225_s26 }
  0x84   : > { %1808 = vrot.lane.b32.xlu1 %v7292_v7, %s7225_s26  ;;  %1806 = vrot.lane.b32.xlu0 %v7286_v3, %s7225_s26 }
  0x86   : > { %v439_v19 = vpop.permute.xlu1 %438  ;;  %v435_v20 = vpop.permute.xlu0 %434 }
  0x88   : > { %1812 = vrot.lane.b32.xlu1 %v7304_v11, %s7225_s26  ;;  %1810 = vrot.lane.b32.xlu0 %v7306_v12, %s7225_s26 }
  0x8a   : > { %v441_v21 = vpop.permute.xlu1 %440  ;;  %v437_v22 = vpop.permute.xlu0 %436 }
  0x8b   : > { %v453_v23 = vsel %vm452_vm2, %v435_v20, %v437_v22  ;;  %v454_v24 = vsel %vm452_vm2, %v437_v22, %v439_v19  ;;  %v455_v26 = vsel %vm452_vm2, %v439_v19, %v441_v21  ;;  %v6502_v19 = vld [vmem:[%s8491_s1 + $0xc] sm:$0xf] }
  0x8c   : > { %1816 = vrot.lane.b32.xlu1 %v7308_v13, %s7225_s26  ;;  %1814 = vrot.lane.b32.xlu0 %v7314_v14, %s7225_s26  ;;  %v465_v25 = vsel %vm207_vm0, %v453_v23, 0  ;;  %v471_v31 = vsel %vm207_vm0, %v455_v26, 0 }
  0x8d   : > { %6485 = vmatprep.subr.msk.bf16.mxu0 %vm207_vm0, %v454_v24 }
  0x8e   : > { %489 = vmatpush1.bf16.msra.mxu0 %v465_v25  ;;  %v445_v27 = vpop.permute.xlu1 %444  ;;  %v443_v28 = vpop.permute.xlu0 %442 }
  0x8f   : > { %v456_v30 = vsel %vm452_vm2, %v441_v21, %v443_v28  ;;  %v457_v32 = vsel %vm452_vm2, %v443_v28, %v445_v27 }
  0x90   : > { %2030 = vrot.lane.b32.xlu1 %v7288_v4, %s7226_s29  ;;  %1818 = vrot.lane.b32.xlu0 %v7344_v18, %s7225_s26  ;;  %v477_v36 = vsel %vm207_vm0, %v457_v32, 0  ;;  %s7233_s26 = smov 8  }
  0x91   : > { %6487 = vmatprep.subr.msk.bf16.mxu1 %vm207_vm0, %v456_v30  ;;  %6486 = vmatmul.mubr.msk.bf16.vlgmr.msra.gmra.mrb[0].mxu0 %vm203_vm1, %v6475_v29 }
  0x92   : > { %530 = vmatpush1.bf16.msra.mxu1 %v471_v31  ;;  %v449_v33 = vpop.permute.xlu1 %448  ;;  %v447_v34 = vpop.permute.xlu0 %446  ;;  %602 = vmatprep.mubr.bf16.mxu0 %v7218_v0 }
  0x93   : > { %v458_v35 = vsel %vm452_vm2, %v445_v27, %v447_v34  ;;  %v459_v37 = vsel %vm452_vm2, %v447_v34, %v449_v33 }
  0x94   : > { %2034 = vrot.lane.b32.xlu1 %v7286_v3, %s7226_s29  ;;  %2032 = vrot.lane.b32.xlu0 %v7294_v8, %s7226_s29  ;;  %v483_v41 = vsel %vm207_vm0, %v459_v37, 0 }
  0x95   : > { %6489 = vmatprep.subr.msk.bf16.mxu0 %vm207_vm0, %v458_v35  ;;  %6488 = vmatmul.mubr.msk.bf16.vlgmr.msra.gmra.mrb[0].mxu1 %vm203_vm1, %v6475_v29 }
  0x96   : > { %571 = vmatpush1.bf16.msra.mxu0 %v477_v36  ;;  %v663_v38 = vpop.permute.xlu1 %662  ;;  %v451_v39 = vpop.permute.xlu0 %450  ;;  %643 = vmatprep.mubr.bf16.mxu1 %v7218_v0 }
  0x97   : > { %v460_v40 = vsel %vm452_vm2, %v449_v33, %v451_v39  ;;  %v6511_v39 = vld [vmem:[%s8491_s1 + $0x10] sm:$0xf]  ;;  %vm3872_vm2 = vcmask 56320  }
  0x98   : > { %2038 = vrot.lane.b32.xlu1 %v7306_v12, %s7226_s29  ;;  %2036 = vrot.lane.b32.xlu0 %v7292_v7, %s7226_s29 }
  0x99   : > { %6491 = vmatprep.subr.msk.bf16.mxu1 %vm207_vm0, %v460_v40  ;;  %6490 = vmatmul.mubr.msk.bf16.vlgmr.msra.gmra.mrb[4].mxu0 %vm203_vm1, %v6475_v29 }
  0x9a   : > { %612 = vmatpush1.bf16.msra.mxu1 %v483_v41  ;;  %v667_v42 = vpop.permute.xlu1 %666  ;;  %v665_v43 = vpop.permute.xlu0 %664  ;;  %748 = vmatprep.mubr.bf16.mxu0 %v7218_v0 }
  0x9b   : > { %v681_v44 = vsel %vm680_vm3, %v663_v38, %v665_v43  ;;  %v682_v45 = vsel %vm680_vm3, %v665_v43, %v667_v42 }
  0x9c   : > { %2042 = vrot.lane.b32.xlu1 %v7314_v14, %s7226_s29  ;;  %2040 = vrot.lane.b32.xlu0 %v7304_v11, %s7226_s29  ;;  %v693_v46 = vsel %vm207_vm0, %v681_v44, 0 }
  0x9d   : > { %6494 = vmatprep.subr.msk.bf16.mxu0 %vm207_vm0, %v682_v45  ;;  %6492 = vmatmul.mubr.msk.bf16.vlgmr.msra.gmra.mrb[4].mxu1 %vm203_vm1, %v6475_v29 }
  0x9e   : > { %717 = vmatpush1.bf16.msra.mxu0 %v693_v46  ;;  %v671_v47 = vpop.permute.xlu1 %670  ;;  %v669_v48 = vpop.permute.xlu0 %668  ;;  %789 = vmatprep.mubr.bf16.mxu1 %v7218_v0 }
  0x9f   : > { %v683_v50 = vsel %vm680_vm3, %v667_v42, %v669_v48  ;;  %v684_v51 = vsel %vm680_vm3, %v669_v48, %v671_v47 }
  0xa0   : > { %2046 = vrot.lane.b32.xlu1 %v7344_v18, %s7226_s29  ;;  %2044 = vrot.lane.b32.xlu0 %v7308_v13, %s7226_s29  ;;  %v699_v52 = vsel %vm207_vm0, %v683_v50, 0  ;;  %s7234_s29 = smov 7  }
  0xa1   : > { %6496 = vmatprep.subr.msk.bf16.mxu1 %vm207_vm0, %v684_v51  ;;  %6495 = vmatmul.mubr.msk.bf16.vlgmr.msra.gmra.mrb[0].mxu0 %vm203_vm1, %v6493_v49 }
  0xa2   : > { %758 = vmatpush1.bf16.msra.mxu1 %v699_v52  ;;  %v675_v53 = vpop.permute.xlu1 %674  ;;  %v673_v54 = vpop.permute.xlu0 %672  ;;  %830 = vmatprep.mubr.bf16.mxu0 %v7218_v0 }
  0xa3   : > { %v685_v55 = vsel %vm680_vm3, %v671_v47, %v673_v54  ;;  %v686_v56 = vsel %vm680_vm3, %v673_v54, %v675_v53 }
  0xa4   : > { %2260 = vrot.lane.b32.xlu1 %v7294_v8, %s7227_s5  ;;  %2258 = vrot.lane.b32.xlu0 %v7288_v4, %s7227_s5  ;;  %v705_v57 = vsel %vm207_vm0, %v685_v55, 0 }
  0xa5   : > { %6498 = vmatprep.subr.msk.bf16.mxu0 %vm207_vm0, %v686_v56  ;;  %6497 = vmatmul.mubr.msk.bf16.vlgmr.msra.gmra.mrb[0].mxu1 %vm203_vm1, %v6493_v49 }
  0xa6   : > { %799 = vmatpush1.bf16.msra.mxu0 %v705_v57  ;;  %v679_v58 = vpop.permute.xlu1 %678  ;;  %v677_v59 = vpop.permute.xlu0 %676  ;;  %871 = vmatprep.mubr.bf16.mxu1 %v7218_v0 }
  0xa7   : > { %v687_v60 = vsel %vm680_vm3, %v675_v53, %v677_v59  ;;  %v688_v61 = vsel %vm680_vm3, %v677_v59, %v679_v58  ;;  %vm4100_vm3 = vcmask 48128  }
  0xa8   : > { %2264 = vrot.lane.b32.xlu1 %v7292_v7, %s7227_s5  ;;  %2262 = vrot.lane.b32.xlu0 %v7286_v3, %s7227_s5  ;;  %v711_v62 = vsel %vm207_vm0, %v687_v60, 0 }
  0xa9   : > { %6500 = vmatprep.subr.msk.bf16.mxu1 %vm207_vm0, %v688_v61  ;;  %6499 = vmatmul.mubr.msk.bf16.vlgmr.msra.gmra.mrb[4].mxu0 %vm203_vm1, %v6493_v49 }
  0xaa   : > { %840 = vmatpush1.bf16.msra.mxu1 %v711_v62  ;;  %v893_v63 = vpop.permute.xlu1 %892  ;;  %v891_v1 = vpop.permute.xlu0 %890  ;;  %976 = vmatprep.mubr.bf16.mxu0 %v7218_v0 }
  0xab   : > { %v909_v2 = vsel %vm908_vm4, %v891_v1, %v893_v63 }
  0xac   : > { %2268 = vrot.lane.b32.xlu1 %v7304_v11, %s7227_s5  ;;  %2266 = vrot.lane.b32.xlu0 %v7306_v12, %s7227_s5  ;;  %v921_v10 = vsel %vm207_vm0, %v909_v2, 0 }
  0xad   : > { %6501 = vmatmul.mubr.msk.bf16.vlgmr.msra.gmra.mrb[4].mxu1 %vm203_vm1, %v6493_v49 }
  0xae   : > { %v897_v5 = vpop.permute.xlu1 %896  ;;  %v895_v6 = vpop.permute.xlu0 %894  ;;  %1017 = vmatprep.mubr.bf16.mxu1 %v7218_v0 }
  0xaf   : > { %v910_v9 = vsel %vm908_vm4, %v893_v63, %v895_v6  ;;  %v911_v15 = vsel %vm908_vm4, %v895_v6, %v897_v5  ;;  %v6520_v63 = vld [vmem:[%s8491_s1 + $0x14] sm:$0xf] }
  0xb0   : > { %2272 = vrot.lane.b32.xlu1 %v7308_v13, %s7227_s5  ;;  %2270 = vrot.lane.b32.xlu0 %v7314_v14, %s7227_s5  ;;  %v927_v21 = vsel %vm207_vm0, %v911_v15, 0 }
  0xb1   : > { %6503 = vmatprep.subr.msk.bf16.mxu0 %vm207_vm0, %v910_v9 }
  0xb2   : > { %945 = vmatpush1.bf16.msra.mxu0 %v921_v10  ;;  %v901_v16 = vpop.permute.xlu1 %900  ;;  %v899_v17 = vpop.permute.xlu0 %898 }
  0xb3   : > { %v912_v20 = vsel %vm908_vm4, %v897_v5, %v899_v17  ;;  %v913_v22 = vsel %vm908_vm4, %v899_v17, %v901_v16 }
  0xb4   : > { %2486 = vrot.lane.b32.xlu1 %v7288_v4, %s7228_s8  ;;  %2274 = vrot.lane.b32.xlu0 %v7344_v18, %s7227_s5  ;;  %v933_v26 = vsel %vm207_vm0, %v913_v22, 0  ;;  %s7235_s5 = smov 6  }
  0xb5   : > { %6505 = vmatprep.subr.msk.bf16.mxu1 %vm207_vm0, %v912_v20  ;;  %6504 = vmatmul.mubr.msk.bf16.vlgmr.msra.gmra.mrb[0].mxu0 %vm203_vm1, %v6502_v19 }
  0xb6   : > { %986 = vmatpush1.bf16.msra.mxu1 %v927_v21  ;;  %v905_v23 = vpop.permute.xlu1 %904  ;;  %v903_v24 = vpop.permute.xlu0 %902  ;;  %1058 = vmatprep.mubr.bf16.mxu0 %v7218_v0 }
  0xb7   : > { %v914_v25 = vsel %vm908_vm4, %v901_v16, %v903_v24  ;;  %v915_v27 = vsel %vm908_vm4, %v903_v24, %v905_v23 }
  0xb8   : > { %2490 = vrot.lane.b32.xlu1 %v7286_v3, %s7228_s8  ;;  %2488 = vrot.lane.b32.xlu0 %v7294_v8, %s7228_s8  ;;  %v939_v31 = vsel %vm207_vm0, %v915_v27, 0 }
  0xb9   : > { %6507 = vmatprep.subr.msk.bf16.mxu0 %vm207_vm0, %v914_v25  ;;  %6506 = vmatmul.mubr.msk.bf16.vlgmr.msra.gmra.mrb[0].mxu1 %vm203_vm1, %v6502_v19 }
  0xba   : > { %1027 = vmatpush1.bf16.msra.mxu0 %v933_v26  ;;  %v1119_v28 = vpop.permute.xlu1 %1118  ;;  %v907_v29 = vpop.permute.xlu0 %906  ;;  %1099 = vmatprep.mubr.bf16.mxu1 %v7218_v0 }
  0xbb   : > { %v916_v30 = vsel %vm908_vm4, %v905_v23, %v907_v29  ;;  %v6529_v29 = vld [vmem:[%s8491_s1 + $0x18] sm:$0xf]  ;;  %vm4356_vm4 = vcmask 457728  }
  0xbc   : > { %2494 = vrot.lane.b32.xlu1 %v7306_v12, %s7228_s8  ;;  %2492 = vrot.lane.b32.xlu0 %v7292_v7, %s7228_s8 }
  0xbd   : > { %6509 = vmatprep.subr.msk.bf16.mxu1 %vm207_vm0, %v916_v30  ;;  %6508 = vmatmul.mubr.msk.bf16.vlgmr.msra.gmra.mrb[4].mxu0 %vm203_vm1, %v6502_v19 }
  0xbe   : > { %1068 = vmatpush1.bf16.msra.mxu1 %v939_v31  ;;  %v1123_v32 = vpop.permute.xlu1 %1122  ;;  %v1121_v33 = vpop.permute.xlu0 %1120  ;;  %1204 = vmatprep.mubr.bf16.mxu0 %v7218_v0 }
  0xbf   : > { %v1137_v34 = vsel %vm1136_vm5, %v1119_v28, %v1121_v33  ;;  %v1138_v35 = vsel %vm1136_vm5, %v1121_v33, %v1123_v32 }
  0xc0   : > { %2498 = vrot.lane.b32.xlu1 %v7314_v14, %s7228_s8  ;;  %2496 = vrot.lane.b32.xlu0 %v7304_v11, %s7228_s8  ;;  %v1149_v36 = vsel %vm207_vm0, %v1137_v34, 0 }
  0xc1   : > { %6512 = vmatprep.subr.msk.bf16.mxu0 %vm207_vm0, %v1138_v35  ;;  %6510 = vmatmul.mubr.msk.bf16.vlgmr.msra.gmra.mrb[4].mxu1 %vm203_vm1, %v6502_v19 }
  0xc2   : > { %1173 = vmatpush1.bf16.msra.mxu0 %v1149_v36  ;;  %v1127_v37 = vpop.permute.xlu1 %1126  ;;  %v1125_v38 = vpop.permute.xlu0 %1124  ;;  %1245 = vmatprep.mubr.bf16.mxu1 %v7218_v0 }
  0xc3   : > { %v1139_v40 = vsel %vm1136_vm5, %v1123_v32, %v1125_v38  ;;  %v1140_v41 = vsel %vm1136_vm5, %v1125_v38, %v1127_v37 }
  0xc4   : > { %2502 = vrot.lane.b32.xlu1 %v7344_v18, %s7228_s8  ;;  %2500 = vrot.lane.b32.xlu0 %v7308_v13, %s7228_s8  ;;  %v1155_v42 = vsel %vm207_vm0, %v1139_v40, 0  ;;  %s7236_s8 = smov 56  }
  0xc5   : > { %6514 = vmatprep.subr.msk.bf16.mxu1 %vm207_vm0, %v1140_v41  ;;  %6513 = vmatmul.mubr.msk.bf16.vlgmr.msra.gmra.mrb[0].mxu0 %vm203_vm1, %v6511_v39 }
  0xc6   : > { %1214 = vmatpush1.bf16.msra.mxu1 %v1155_v42  ;;  %v1131_v43 = vpop.permute.xlu1 %1130  ;;  %v1129_v44 = vpop.permute.xlu0 %1128  ;;  %1286 = vmatprep.mubr.bf16.mxu0 %v7218_v0 }
  0xc7   : > { %v1141_v45 = vsel %vm1136_vm5, %v1127_v37, %v1129_v44  ;;  %v1142_v46 = vsel %vm1136_vm5, %v1129_v44, %v1131_v43 }
  0xc8   : > { %2716 = vrot.lane.b32.xlu1 %v7294_v8, %s7229_s11  ;;  %2714 = vrot.lane.b32.xlu0 %v7288_v4, %s7229_s11  ;;  %v1161_v47 = vsel %vm207_vm0, %v1141_v45, 0 }
  0xc9   : > { %6516 = vmatprep.subr.msk.bf16.mxu0 %vm207_vm0, %v1142_v46  ;;  %6515 = vmatmul.mubr.msk.bf16.vlgmr.msra.gmra.mrb[0].mxu1 %vm203_vm1, %v6511_v39 }
  0xca   : > { %1255 = vmatpush1.bf16.msra.mxu0 %v1161_v47  ;;  %v1135_v48 = vpop.permute.xlu1 %1134  ;;  %v1133_v49 = vpop.permute.xlu0 %1132  ;;  %1327 = vmatprep.mubr.bf16.mxu1 %v7218_v0 }
  0xcb   : > { %v1143_v50 = vsel %vm1136_vm5, %v1131_v43, %v1133_v49  ;;  %v1144_v51 = vsel %vm1136_vm5, %v1133_v49, %v1135_v48  ;;  %vm4584_vm5 = vcmask 449536  }
  0xcc   : > { %2720 = vrot.lane.b32.xlu1 %v7292_v7, %s7229_s11  ;;  %2718 = vrot.lane.b32.xlu0 %v7286_v3, %s7229_s11  ;;  %v1167_v52 = vsel %vm207_vm0, %v1143_v50, 0 }
  0xcd   : > { %6518 = vmatprep.subr.msk.bf16.mxu1 %vm207_vm0, %v1144_v51  ;;  %6517 = vmatmul.mubr.msk.bf16.vlgmr.msra.gmra.mrb[4].mxu0 %vm203_vm1, %v6511_v39 }
  0xce   : > { %1296 = vmatpush1.bf16.msra.mxu1 %v1167_v52  ;;  %v1349_v53 = vpop.permute.xlu1 %1348  ;;  %v1347_v54 = vpop.permute.xlu0 %1346  ;;  %1432 = vmatprep.mubr.bf16.mxu0 %v7218_v0 }
  0xcf   : > { %v1365_v55 = vsel %vm1364_vm6, %v1347_v54, %v1349_v53 }
  0xd0   : > { %2724 = vrot.lane.b32.xlu1 %v7304_v11, %s7229_s11  ;;  %2722 = vrot.lane.b32.xlu0 %v7306_v12, %s7229_s11  ;;  %v1377_v59 = vsel %vm207_vm0, %v1365_v55, 0 }
  0xd1   : > { %6519 = vmatmul.mubr.msk.bf16.vlgmr.msra.gmra.mrb[4].mxu1 %vm203_vm1, %v6511_v39 }
  0xd2   : > { %v1353_v56 = vpop.permute.xlu1 %1352  ;;  %v1351_v57 = vpop.permute.xlu0 %1350  ;;  %1473 = vmatprep.mubr.bf16.mxu1 %v7218_v0 }
  0xd3   : > { %v1366_v58 = vsel %vm1364_vm6, %v1349_v53, %v1351_v57  ;;  %v1367_v60 = vsel %vm1364_vm6, %v1351_v57, %v1353_v56  ;;  %v6538_v53 = vld [vmem:[%s8491_s1 + $0x1c] sm:$0xf] }
  0xd4   : > { %2728 = vrot.lane.b32.xlu1 %v7308_v13, %s7229_s11  ;;  %2726 = vrot.lane.b32.xlu0 %v7314_v14, %s7229_s11  ;;  %v1383_v2 = vsel %vm207_vm0, %v1367_v60, 0 }
  0xd5   : > { %6521 = vmatprep.subr.msk.bf16.mxu0 %vm207_vm0, %v1366_v58 }
  0xd6   : > { %1401 = vmatpush1.bf16.msra.mxu0 %v1377_v59  ;;  %v1357_v61 = vpop.permute.xlu1 %1356  ;;  %v1355_v62 = vpop.permute.xlu0 %1354 }
  0xd7   : > { %v1368_v1 = vsel %vm1364_vm6, %v1353_v56, %v1355_v62  ;;  %v1369_v5 = vsel %vm1364_vm6, %v1355_v62, %v1357_v61 }
  0xd8   : > { %2942 = vrot.lane.b32.xlu1 %v7288_v4, %s7230_s16  ;;  %2730 = vrot.lane.b32.xlu0 %v7344_v18, %s7229_s11  ;;  %v1389_v15 = vsel %vm207_vm0, %v1369_v5, 0 }
  0xd9   : > { %6523 = vmatprep.subr.msk.bf16.mxu1 %vm207_vm0, %v1368_v1  ;;  %6522 = vmatmul.mubr.msk.bf16.vlgmr.msra.gmra.mrb[0].mxu0 %vm203_vm1, %v6520_v63 }
  0xda   : > { %1442 = vmatpush1.bf16.msra.mxu1 %v1383_v2  ;;  %v1361_v6 = vpop.permute.xlu1 %1360  ;;  %v1359_v9 = vpop.permute.xlu0 %1358  ;;  %1514 = vmatprep.mubr.bf16.mxu0 %v7218_v0 }
  0xdb   : > { %v1370_v10 = vsel %vm1364_vm6, %v1357_v61, %v1359_v9  ;;  %v1371_v16 = vsel %vm1364_vm6, %v1359_v9, %v1361_v6 }
  0xdc   : > { %2946 = vrot.lane.b32.xlu1 %v7286_v3, %s7230_s16  ;;  %2944 = vrot.lane.b32.xlu0 %v7294_v8, %s7230_s16  ;;  %v1395_v21 = vsel %vm207_vm0, %v1371_v16, 0 }
  0xdd   : > { %6525 = vmatprep.subr.msk.bf16.mxu0 %vm207_vm0, %v1370_v10  ;;  %6524 = vmatmul.mubr.msk.bf16.vlgmr.msra.gmra.mrb[0].mxu1 %vm203_vm1, %v6520_v63 }
  0xde   : > { %1483 = vmatpush1.bf16.msra.mxu0 %v1389_v15  ;;  %v1575_v17 = vpop.permute.xlu1 %1574  ;;  %v1363_v19 = vpop.permute.xlu0 %1362  ;;  %1555 = vmatprep.mubr.bf16.mxu1 %v7218_v0 }
  0xdf   : > { %v1372_v20 = vsel %vm1364_vm6, %v1361_v6, %v1363_v19  ;;  %v6547_v19 = vld [vmem:[%s8491_s1 + $0x20] sm:$0xf]  ;;  %vm4812_vm6 = vcmask 441344  }
  0xe0   : > { %2950 = vrot.lane.b32.xlu1 %v7306_v12, %s7230_s16  ;;  %2948 = vrot.lane.b32.xlu0 %v7292_v7, %s7230_s16 }
  0xe1   : > { %6527 = vmatprep.subr.msk.bf16.mxu1 %vm207_vm0, %v1372_v20  ;;  %6526 = vmatmul.mubr.msk.bf16.vlgmr.msra.gmra.mrb[4].mxu0 %vm203_vm1, %v6520_v63 }
  0xe2   : > { %1524 = vmatpush1.bf16.msra.mxu1 %v1395_v21  ;;  %v1579_v22 = vpop.permute.xlu1 %1578  ;;  %v1577_v23 = vpop.permute.xlu0 %1576  ;;  %1660 = vmatprep.mubr.bf16.mxu0 %v7218_v0 }
  0xe3   : > { %v1593_v24 = vsel %vm1592_vm7, %v1575_v17, %v1577_v23  ;;  %v1594_v25 = vsel %vm1592_vm7, %v1577_v23, %v1579_v22 }
  0xe4   : > { %2954 = vrot.lane.b32.xlu1 %v7314_v14, %s7230_s16  ;;  %2952 = vrot.lane.b32.xlu0 %v7304_v11, %s7230_s16  ;;  %v1605_v26 = vsel %vm207_vm0, %v1593_v24, 0 }
  0xe5   : > { %6530 = vmatprep.subr.msk.bf16.mxu0 %vm207_vm0, %v1594_v25  ;;  %6528 = vmatmul.mubr.msk.bf16.vlgmr.msra.gmra.mrb[4].mxu1 %vm203_vm1, %v6520_v63 }
  0xe6   : > { %1629 = vmatpush1.bf16.msra.mxu0 %v1605_v26  ;;  %v1583_v27 = vpop.permute.xlu1 %1582  ;;  %v1581_v28 = vpop.permute.xlu0 %1580  ;;  %1701 = vmatprep.mubr.bf16.mxu1 %v7218_v0 }
  0xe7   : > { %v1595_v30 = vsel %vm1592_vm7, %v1579_v22, %v1581_v28  ;;  %v1596_v31 = vsel %vm1592_vm7, %v1581_v28, %v1583_v27 }
  0xe8   : > { %2958 = vrot.lane.b32.xlu1 %v7344_v18, %s7230_s16  ;;  %2956 = vrot.lane.b32.xlu0 %v7308_v13, %s7230_s16  ;;  %v1611_v32 = vsel %vm207_vm0, %v1595_v30, 0 }
  0xe9   : > { %6532 = vmatprep.subr.msk.bf16.mxu1 %vm207_vm0, %v1596_v31  ;;  %6531 = vmatmul.mubr.msk.bf16.vlgmr.msra.gmra.mrb[0].mxu0 %vm203_vm1, %v6529_v29 }
  0xea   : > { %1670 = vmatpush1.bf16.msra.mxu1 %v1611_v32  ;;  %v1587_v33 = vpop.permute.xlu1 %1586  ;;  %v1585_v34 = vpop.permute.xlu0 %1584  ;;  %1742 = vmatprep.mubr.bf16.mxu0 %v7218_v0 }
  0xeb   : > { %v1597_v35 = vsel %vm1592_vm7, %v1583_v27, %v1585_v34  ;;  %v1598_v36 = vsel %vm1592_vm7, %v1585_v34, %v1587_v33 }
  0xec   : > { %3172 = vrot.lane.b32.xlu1 %v7294_v8, %s7231_s20  ;;  %3170 = vrot.lane.b32.xlu0 %v7288_v4, %s7231_s20  ;;  %v1617_v37 = vsel %vm207_vm0, %v1597_v35, 0 }
  0xed   : > { %6534 = vmatprep.subr.msk.bf16.mxu0 %vm207_vm0, %v1598_v36  ;;  %6533 = vmatmul.mubr.msk.bf16.vlgmr.msra.gmra.mrb[0].mxu1 %vm203_vm1, %v6529_v29 }
  0xee   : > { %1711 = vmatpush1.bf16.msra.mxu0 %v1617_v37  ;;  %v1591_v38 = vpop.permute.xlu1 %1590  ;;  %v1589_v39 = vpop.permute.xlu0 %1588  ;;  %1783 = vmatprep.mubr.bf16.mxu1 %v7218_v0 }
  0xef   : > { %v1599_v40 = vsel %vm1592_vm7, %v1587_v33, %v1589_v39  ;;  %v1600_v41 = vsel %vm1592_vm7, %v1589_v39, %v1591_v38  ;;  %vm5040_vm7 = vcmask 375808  }
  0xf0   : > { %3176 = vrot.lane.b32.xlu1 %v7292_v7, %s7231_s20  ;;  %3174 = vrot.lane.b32.xlu0 %v7286_v3, %s7231_s20  ;;  %v1623_v42 = vsel %vm207_vm0, %v1599_v40, 0 }
  0xf1   : > { %6536 = vmatprep.subr.msk.bf16.mxu1 %vm207_vm0, %v1600_v41  ;;  %6535 = vmatmul.mubr.msk.bf16.vlgmr.msra.gmra.mrb[4].mxu0 %vm203_vm1, %v6529_v29 }
  0xf2   : > { %1752 = vmatpush1.bf16.msra.mxu1 %v1623_v42  ;;  %v1805_v43 = vpop.permute.xlu1 %1804  ;;  %v1803_v44 = vpop.permute.xlu0 %1802  ;;  %1888 = vmatprep.mubr.bf16.mxu0 %v7218_v0 }
  0xf3   : > { %v1821_v45 = vsel %vm1820_vm8, %v1803_v44, %v1805_v43 }
  0xf4   : > { %3180 = vrot.lane.b32.xlu1 %v7304_v11, %s7231_s20  ;;  %3178 = vrot.lane.b32.xlu0 %v7306_v12, %s7231_s20  ;;  %v1833_v49 = vsel %vm207_vm0, %v1821_v45, 0 }
  0xf5   : > { %6537 = vmatmul.mubr.msk.bf16.vlgmr.msra.gmra.mrb[4].mxu1 %vm203_vm1, %v6529_v29 }
  0xf6   : > { %v1809_v46 = vpop.permute.xlu1 %1808  ;;  %v1807_v47 = vpop.permute.xlu0 %1806  ;;  %1929 = vmatprep.mubr.bf16.mxu1 %v7218_v0 }
  0xf7   : > { %v1822_v48 = vsel %vm1820_vm8, %v1805_v43, %v1807_v47  ;;  %v1823_v50 = vsel %vm1820_vm8, %v1807_v47, %v1809_v46  ;;  %v6556_v43 = vld [vmem:[%s8491_s1 + $0x24] sm:$0xf] }
  0xf8   : > { %3184 = vrot.lane.b32.xlu1 %v7308_v13, %s7231_s20  ;;  %3182 = vrot.lane.b32.xlu0 %v7314_v14, %s7231_s20  ;;  %v1839_v55 = vsel %vm207_vm0, %v1823_v50, 0 }
  0xf9   : > { %6539 = vmatprep.subr.msk.bf16.mxu0 %vm207_vm0, %v1822_v48 }
  0xfa   : > { %1857 = vmatpush1.bf16.msra.mxu0 %v1833_v49  ;;  %v1813_v51 = vpop.permute.xlu1 %1812  ;;  %v1811_v52 = vpop.permute.xlu0 %1810 }
  0xfb   : > { %v1824_v54 = vsel %vm1820_vm8, %v1809_v46, %v1811_v52  ;;  %v1825_v56 = vsel %vm1820_vm8, %v1811_v52, %v1813_v51 }
  0xfc   : > { %3398 = vrot.lane.b32.xlu1 %v7288_v4, %s7232_s23  ;;  %3186 = vrot.lane.b32.xlu0 %v7344_v18, %s7231_s20  ;;  %v1845_v60 = vsel %vm207_vm0, %v1825_v56, 0 }
  0xfd   : > { %6541 = vmatprep.subr.msk.bf16.mxu1 %vm207_vm0, %v1824_v54  ;;  %6540 = vmatmul.mubr.msk.bf16.vlgmr.msra.gmra.mrb[0].mxu0 %vm203_vm1, %v6538_v53 }
  0xfe   : > { %1898 = vmatpush1.bf16.msra.mxu1 %v1839_v55  ;;  %v1817_v57 = vpop.permute.xlu1 %1816  ;;  %v1815_v58 = vpop.permute.xlu0 %1814  ;;  %1970 = vmatprep.mubr.bf16.mxu0 %v7218_v0 }
  0xff   : > { %v1826_v59 = vsel %vm1820_vm8, %v1813_v51, %v1815_v58  ;;  %v1827_v61 = vsel %vm1820_vm8, %v1815_v58, %v1817_v57 }
 0x100   : > { %3402 = vrot.lane.b32.xlu1 %v7286_v3, %s7232_s23  ;;  %3400 = vrot.lane.b32.xlu0 %v7294_v8, %s7232_s23  ;;  %v1851_v2 = vsel %vm207_vm0, %v1827_v61, 0 }
 0x101   : > { %6543 = vmatprep.subr.msk.bf16.mxu0 %vm207_vm0, %v1826_v59  ;;  %6542 = vmatmul.mubr.msk.bf16.vlgmr.msra.gmra.mrb[0].mxu1 %vm203_vm1, %v6538_v53 }
 0x102   : > { %1939 = vmatpush1.bf16.msra.mxu0 %v1845_v60  ;;  %v2031_v62 = vpop.permute.xlu1 %2030  ;;  %v1819_v63 = vpop.permute.xlu0 %1818  ;;  %2011 = vmatprep.mubr.bf16.mxu1 %v7218_v0 }
 0x103   : > { %v1828_v1 = vsel %vm1820_vm8, %v1817_v57, %v1819_v63  ;;  %vm5268_vm8 = vcmask 367616  }
 0x104   : > { %3406 = vrot.lane.b32.xlu1 %v7306_v12, %s7232_s23  ;;  %3404 = vrot.lane.b32.xlu0 %v7292_v7, %s7232_s23 }
 0x105   : > { %6545 = vmatprep.subr.msk.bf16.mxu1 %vm207_vm0, %v1828_v1  ;;  %6544 = vmatmul.mubr.msk.bf16.vlgmr.msra.gmra.mrb[4].mxu0 %vm203_vm1, %v6538_v53 }
 0x106   : > { %1980 = vmatpush1.bf16.msra.mxu1 %v1851_v2  ;;  %v2035_v5 = vpop.permute.xlu1 %2034  ;;  %v2033_v6 = vpop.permute.xlu0 %2032  ;;  %2116 = vmatprep.mubr.bf16.mxu0 %v7218_v0  ;;  %v7209_v2 = vld [vmem:[%s7282_s17 + $0x20] ss:$0 sps:$4 sm:$0xff]  }
 0x107   : > { %v2049_v9 = vsel %vm2048_vm9, %v2031_v62, %v2033_v6  ;;  %v2050_v10 = vsel %vm2048_vm9, %v2033_v6, %v2035_v5  ;;  %v6565_v62 = vld [vmem:[%s8491_s1 + $0x28] sm:$0xf] }
 0x108   : > { %3410 = vrot.lane.b32.xlu1 %v7314_v14, %s7232_s23  ;;  %3408 = vrot.lane.b32.xlu0 %v7304_v11, %s7232_s23  ;;  %v2061_v15 = vsel %vm207_vm0, %v2049_v9, 0 }
 0x109   : > { %6548 = vmatprep.subr.msk.bf16.mxu0 %vm207_vm0, %v2050_v10  ;;  %6546 = vmatmul.mubr.msk.bf16.vlgmr.msra.gmra.mrb[4].mxu1 %vm203_vm1, %v6538_v53 }
 0x10a   : > { %2085 = vmatpush1.bf16.msra.mxu0 %v2061_v15  ;;  %v2039_v16 = vpop.permute.xlu1 %2038  ;;  %v2037_v17 = vpop.permute.xlu0 %2036  ;;  %2157 = vmatprep.mubr.bf16.mxu1 %v7218_v0 }
 0x10b   : > { %v2051_v20 = vsel %vm2048_vm9, %v2035_v5, %v2037_v17  ;;  %v2052_v21 = vsel %vm2048_vm9, %v2037_v17, %v2039_v16 }
 0x10c   : > { %3414 = vrot.lane.b32.xlu1 %v7344_v18, %s7232_s23  ;;  %3412 = vrot.lane.b32.xlu0 %v7308_v13, %s7232_s23  ;;  %v2067_v22 = vsel %vm207_vm0, %v2051_v20, 0 }
 0x10d   : > { %6550 = vmatprep.subr.msk.bf16.mxu1 %vm207_vm0, %v2052_v21  ;;  %6549 = vmatmul.mubr.msk.bf16.vlgmr.msra.gmra.mrb[0].mxu0 %vm203_vm1, %v6547_v19 }
 0x10e   : > { %2126 = vmatpush1.bf16.msra.mxu1 %v2067_v22  ;;  %v2043_v23 = vpop.permute.xlu1 %2042  ;;  %v2041_v24 = vpop.permute.xlu0 %2040  ;;  %2198 = vmatprep.mubr.bf16.mxu0 %v7218_v0 }
 0x10f   : > { %v2053_v25 = vsel %vm2048_vm9, %v2039_v16, %v2041_v24  ;;  %v2054_v26 = vsel %vm2048_vm9, %v2041_v24, %v2043_v23 }
 0x110   : > { %3628 = vrot.lane.b32.xlu1 %v7294_v8, %s7233_s26  ;;  %3626 = vrot.lane.b32.xlu0 %v7288_v4, %s7233_s26  ;;  %v2073_v27 = vsel %vm207_vm0, %v2053_v25, 0 }
 0x111   : > { %6552 = vmatprep.subr.msk.bf16.mxu0 %vm207_vm0, %v2054_v26  ;;  %6551 = vmatmul.mubr.msk.bf16.vlgmr.msra.gmra.mrb[0].mxu1 %vm203_vm1, %v6547_v19  ;;  %v4309_v26 = vld [vmem:[%s7282_s17 + $0xc] sm:$0xff] }
 0x112   : > { %2167 = vmatpush1.bf16.msra.mxu0 %v2073_v27  ;;  %v2047_v28 = vpop.permute.xlu1 %2046  ;;  %v2045_v29 = vpop.permute.xlu0 %2044  ;;  %2239 = vmatprep.mubr.bf16.mxu1 %v7218_v0 }
 0x113   : > { %v2055_v30 = vsel %vm2048_vm9, %v2043_v23, %v2045_v29  ;;  %v2056_v31 = vsel %vm2048_vm9, %v2045_v29, %v2047_v28  ;;  %vm5496_vm9 = vcmask 359424  }
 0x114   : > { %3632 = vrot.lane.b32.xlu1 %v7292_v7, %s7233_s26  ;;  %3630 = vrot.lane.b32.xlu0 %v7286_v3, %s7233_s26  ;;  %v2079_v32 = vsel %vm207_vm0, %v2055_v30, 0 }
 0x115   : > { %6554 = vmatprep.subr.msk.bf16.mxu1 %vm207_vm0, %v2056_v31  ;;  %6553 = vmatmul.mubr.msk.bf16.vlgmr.msra.gmra.mrb[4].mxu0 %vm203_vm1, %v6547_v19 }
 0x116   : > { %2208 = vmatpush1.bf16.msra.mxu1 %v2079_v32  ;;  %v2261_v33 = vpop.permute.xlu1 %2260  ;;  %v2259_v34 = vpop.permute.xlu0 %2258  ;;  %2344 = vmatprep.mubr.bf16.mxu0 %v7218_v0 }
 0x117   : > { %v2277_v35 = vsel %vm2276_vm10, %v2259_v34, %v2261_v33 }
 0x118   : > { %3636 = vrot.lane.b32.xlu1 %v7304_v11, %s7233_s26  ;;  %3634 = vrot.lane.b32.xlu0 %v7306_v12, %s7233_s26  ;;  %v2289_v39 = vsel %vm207_vm0, %v2277_v35, 0 }
 0x119   : > { %6555 = vmatmul.mubr.msk.bf16.vlgmr.msra.gmra.mrb[4].mxu1 %vm203_vm1, %v6547_v19 }
 0x11a   : > { %v2265_v36 = vpop.permute.xlu1 %2264  ;;  %v2263_v37 = vpop.permute.xlu0 %2262  ;;  %2385 = vmatprep.mubr.bf16.mxu1 %v7218_v0 }
 0x11b   : > { %v2278_v38 = vsel %vm2276_vm10, %v2261_v33, %v2263_v37  ;;  %v2279_v40 = vsel %vm2276_vm10, %v2263_v37, %v2265_v36  ;;  %v4310_v33 = vld [vmem:[%s7282_s17 + $0x14] sm:$0xff] }
 0x11c   : > { %3640 = vrot.lane.b32.xlu1 %v7308_v13, %s7233_s26  ;;  %3638 = vrot.lane.b32.xlu0 %v7314_v14, %s7233_s26  ;;  %v2295_v45 = vsel %vm207_vm0, %v2279_v40, 0 }
 0x11d   : > { %6557 = vmatprep.subr.msk.bf16.mxu0 %vm207_vm0, %v2278_v38  ;;  %v7885_v38 = vcombine.low %v4310_v33, %v4310_v33 }
 0x11e   : > { %2313 = vmatpush1.bf16.msra.mxu0 %v2289_v39  ;;  %v2269_v41 = vpop.permute.xlu1 %2268  ;;  %v2267_v42 = vpop.permute.xlu0 %2266  ;;  %v7887_v39 = vcombine.high %v4309_v26, %v4309_v26 }
 0x11f   : > { %v2280_v44 = vsel %vm2276_vm10, %v2265_v36, %v2267_v42  ;;  %v2281_v46 = vsel %vm2276_vm10, %v2267_v42, %v2269_v41 }
 0x120   : > { %3854 = vrot.lane.b32.xlu1 %v7288_v4, %s7234_s29  ;;  %3642 = vrot.lane.b32.xlu0 %v7344_v18, %s7233_s26  ;;  %v2301_v18 = vsel %vm207_vm0, %v2281_v46, 0  ;;  %s6729_s26 = sshll.u32 %s8495_s13, 6 }
 0x121   : > { %6559 = vmatprep.subr.msk.bf16.mxu1 %vm207_vm0, %v2280_v44  ;;  %6558 = vmatmul.mubr.msk.bf16.vlgmr.msra.gmra.mrb[0].mxu0 %vm203_vm1, %v6556_v43 }
 0x122   : > { %2354 = vmatpush1.bf16.msra.mxu1 %v2295_v45  ;;  %v2273_v47 = vpop.permute.xlu1 %2272  ;;  %v2271_v48 = vpop.permute.xlu0 %2270  ;;  %2426 = vmatprep.mubr.bf16.mxu0 %v7218_v0 }
 0x123   : > { %v2282_v49 = vsel %vm2276_vm10, %v2269_v41, %v2271_v48  ;;  %v2283_v50 = vsel %vm2276_vm10, %v2271_v48, %v2273_v47  ;;  %v4311_v41 = vld [vmem:[%s7282_s17 + $0x1c] sm:$0xff] }
 0x124   : > { %3858 = vrot.lane.b32.xlu1 %v7286_v3, %s7234_s29  ;;  %3856 = vrot.lane.b32.xlu0 %v7294_v8, %s7234_s29  ;;  %v2307_v54 = vsel %vm207_vm0, %v2283_v50, 0  ;;  %v7900_v46 = vcombine.low %v4311_v41, %v4311_v41 }
 0x125   : > { %6561 = vmatprep.subr.msk.bf16.mxu0 %vm207_vm0, %v2282_v49  ;;  %6560 = vmatmul.mubr.msk.bf16.vlgmr.msra.gmra.mrb[0].mxu1 %vm203_vm1, %v6556_v43 }
 0x126   : > { %2395 = vmatpush1.bf16.msra.mxu0 %v2301_v18  ;;  %v2487_v51 = vpop.permute.xlu1 %2486  ;;  %v2275_v52 = vpop.permute.xlu0 %2274  ;;  %2467 = vmatprep.mubr.bf16.mxu1 %v7218_v0 }
 0x127   : > { %v2284_v53 = vsel %vm2276_vm10, %v2273_v47, %v2275_v52  ;;  %v7902_v47 = vcombine.high %v4310_v33, %v4310_v33  ;;  %vm5724_vm10 = vcmask 293888  }
 0x128   : > { %3862 = vrot.lane.b32.xlu1 %v7306_v12, %s7234_s29  ;;  %3860 = vrot.lane.b32.xlu0 %v7292_v7, %s7234_s29 }
 0x129   : > { %6563 = vmatprep.subr.msk.bf16.mxu1 %vm207_vm0, %v2284_v53  ;;  %6562 = vmatmul.mubr.msk.bf16.vlgmr.msra.gmra.mrb[4].mxu0 %vm203_vm1, %v6556_v43  ;;  %v7916_v53 = vld [vmem:[%s7282_s17 + $0x24] ss:$0 sps:$4 sm:$0xff]  }
 0x12a   : > { %2436 = vmatpush1.bf16.msra.mxu1 %v2307_v54  ;;  %v2491_v55 = vpop.permute.xlu1 %2490  ;;  %v2489_v56 = vpop.permute.xlu0 %2488  ;;  %2572 = vmatprep.mubr.bf16.mxu0 %v7218_v0  ;;  %v7918_v54 = vcombine.high %v4311_v41, %v4311_v41 }
 0x12b   : > { %v2505_v57 = vsel %vm2504_vm11, %v2487_v51, %v2489_v56  ;;  %v2506_v58 = vsel %vm2504_vm11, %v2489_v56, %v2491_v55 }
 0x12c   : > { %3866 = vrot.lane.b32.xlu1 %v7314_v14, %s7234_s29  ;;  %3864 = vrot.lane.b32.xlu0 %v7304_v11, %s7234_s29  ;;  %v2517_v59 = vsel %vm207_vm0, %v2505_v57, 0  ;;  %v6583_v57 = vld [vmem:[%s8491_s1 + $0x30] sm:$0xf] }
 0x12d   : > { %6566 = vmatprep.subr.msk.bf16.mxu0 %vm207_vm0, %v2506_v58  ;;  %6564 = vmatmul.mubr.msk.bf16.vlgmr.msra.gmra.mrb[4].mxu1 %vm203_vm1, %v6556_v43 }
 0x12e   : > { %2541 = vmatpush1.bf16.msra.mxu0 %v2517_v59  ;;  %v2495_v60 = vpop.permute.xlu1 %2494  ;;  %v2493_v61 = vpop.permute.xlu0 %2492  ;;  %2613 = vmatprep.mubr.bf16.mxu1 %v7218_v0 }
 0x12f   : > { %v2507_v63 = vsel %vm2504_vm11, %v2491_v55, %v2493_v61  ;;  %v2508_v1 = vsel %vm2504_vm11, %v2493_v61, %v2495_v60 }
 0x130   : > { %3870 = vrot.lane.b32.xlu1 %v7209_v2, %s7234_s29  ;;  %3868 = vrot.lane.b32.xlu0 %v7308_v13, %s7234_s29  ;;  %v2523_v5 = vsel %vm207_vm0, %v2507_v63, 0  ;;  %s8477_s29 = scalar_lea.vmem %s8493_s3, %s6729_s26 }
 0x131   : > { %6568 = vmatprep.subr.msk.bf16.mxu1 %vm207_vm0, %v2508_v1  ;;  %6567 = vmatmul.mubr.msk.bf16.vlgmr.msra.gmra.mrb[0].mxu0 %vm203_vm1, %v6565_v62 }
 0x132   : > { %2582 = vmatpush1.bf16.msra.mxu1 %v2523_v5  ;;  %v2499_v6 = vpop.permute.xlu1 %2498  ;;  %v2497_v9 = vpop.permute.xlu0 %2496  ;;  %2654 = vmatprep.mubr.bf16.mxu0 %v7218_v0 }
 0x133   : > { %v2509_v10 = vsel %vm2504_vm11, %v2495_v60, %v2497_v9  ;;  %v2510_v15 = vsel %vm2504_vm11, %v2497_v9, %v2499_v6 }
 0x134   : > { %4084 = vrot.lane.b32.xlu1 %v7294_v8, %s7235_s5  ;;  %4082 = vrot.lane.b32.xlu0 %v7288_v4, %s7235_s5  ;;  %v2529_v16 = vsel %vm207_vm0, %v2509_v10, 0 }
 0x135   : > { %6570 = vmatprep.subr.msk.bf16.mxu0 %vm207_vm0, %v2510_v15  ;;  %6569 = vmatmul.mubr.msk.bf16.vlgmr.msra.gmra.mrb[0].mxu1 %vm203_vm1, %v6565_v62 }
 0x136   : > { %2623 = vmatpush1.bf16.msra.mxu0 %v2529_v16  ;;  %v2503_v17 = vpop.permute.xlu1 %2502  ;;  %v2501_v19 = vpop.permute.xlu0 %2500  ;;  %2695 = vmatprep.mubr.bf16.mxu1 %v7218_v0 }
 0x137   : > { %v2511_v20 = vsel %vm2504_vm11, %v2499_v6, %v2501_v19  ;;  %v2512_v21 = vsel %vm2504_vm11, %v2501_v19, %v2503_v17  ;;  %vm5952_vm11 = vcmask 285696  }
 0x138   : > { %4088 = vrot.lane.b32.xlu1 %v7292_v7, %s7235_s5  ;;  %4086 = vrot.lane.b32.xlu0 %v7286_v3, %s7235_s5  ;;  %v2535_v4 = vsel %vm207_vm0, %v2511_v20, 0  ;;  %v4308_v3 = vld [vmem:[%s7282_s17 + $0x4] sm:$0xff]  ;;  %s7237_s17 = smov 55  }
 0x139   : > { %6572 = vmatprep.subr.msk.bf16.mxu1 %vm207_vm0, %v2512_v21  ;;  %6571 = vmatmul.mubr.msk.bf16.vlgmr.msra.gmra.mrb[4].mxu0 %vm203_vm1, %v6565_v62  ;;  %v7872_v31 = vcombine.high %v4308_v3, %v4308_v3 }
 0x13a   : > { %2664 = vmatpush1.bf16.msra.mxu1 %v2535_v4  ;;  %v2717_v8 = vpop.permute.xlu1 %2716  ;;  %v2715_v22 = vpop.permute.xlu0 %2714  ;;  %2800 = vmatprep.mubr.bf16.mxu0 %v7218_v0 }
 0x13b   : > { %v2733_v7 = vsel %vm2732_vm12, %v2715_v22, %v2717_v8 }
 0x13c   : > { %4092 = vrot.lane.b32.xlu1 %v7304_v11, %s7235_s5  ;;  %4090 = vrot.lane.b32.xlu0 %v7306_v12, %s7235_s5  ;;  %v7857_v11 = vcombine.low %v4308_v3, %v4308_v3  ;;  %v2745_v12 = vsel %vm207_vm0, %v2733_v7, 0 }
 0x13d   : > { %6573 = vmatmul.mubr.msk.bf16.vlgmr.msra.gmra.mrb[4].mxu1 %vm203_vm1, %v6565_v62 }
 0x13e   : > { %v2721_v23 = vpop.permute.xlu1 %2720  ;;  %v2719_v24 = vpop.permute.xlu0 %2718  ;;  %2841 = vmatprep.mubr.bf16.mxu1 %v7218_v0 }
 0x13f   : > { %v2734_v25 = vsel %vm2732_vm12, %v2717_v8, %v2719_v24  ;;  %v2735_v27 = vsel %vm2732_vm12, %v2719_v24, %v2721_v23 }
 0x140   : > { %4096 = vrot.lane.b32.xlu1 %v7308_v13, %s7235_s5  ;;  %4094 = vrot.lane.b32.xlu0 %v7314_v14, %s7235_s5  ;;  %v6574_v13 = vld [vmem:[%s8491_s1 + $0x2c] sm:$0xf]  ;;  %v7870_v14 = vcombine.low %v4309_v26, %v4309_v26  ;;  %v2751_v32 = vsel %vm207_vm0, %v2735_v27, 0 }
 0x141   : > { %6575 = vmatprep.subr.msk.bf16.mxu0 %vm207_vm0, %v2734_v25 }
 0x142   : > { %2769 = vmatpush1.bf16.msra.mxu0 %v2745_v12  ;;  %v2725_v28 = vpop.permute.xlu1 %2724  ;;  %v2723_v29 = vpop.permute.xlu0 %2722 }
 0x143   : > { %v2736_v30 = vsel %vm2732_vm12, %v2721_v23, %v2723_v29  ;;  %v2737_v34 = vsel %vm2732_vm12, %v2723_v29, %v2725_v28  ;;  %v6592_v23 = vld [vmem:[%s8491_s1 + $0x34] sm:$0xf] }
 0x144   : > { %4338 = vrot.lane.b32.xlu1 %v7857_v11, %s7236_s8  ;;  %4098 = vrot.lane.b32.xlu0 %v7209_v2, %s7235_s5  ;;  %v2757_v40 = vsel %vm207_vm0, %v2737_v34, 0 }
 0x145   : > { %6577 = vmatprep.subr.msk.bf16.mxu1 %vm207_vm0, %v2736_v30  ;;  %6576 = vmatmul.mubr.msk.bf16.vlgmr.msra.gmra.mrb[0].mxu0 %vm203_vm1, %v6574_v13 }
 0x146   : > { %2810 = vmatpush1.bf16.msra.mxu1 %v2751_v32  ;;  %v2729_v35 = vpop.permute.xlu1 %2728  ;;  %v2727_v36 = vpop.permute.xlu0 %2726  ;;  %2882 = vmatprep.mubr.bf16.mxu0 %v7218_v0 }
 0x147   : > { %v2738_v37 = vsel %vm2732_vm12, %v2725_v28, %v2727_v36  ;;  %v2739_v42 = vsel %vm2732_vm12, %v2727_v36, %v2729_v35 }
 0x148   : > { %4342 = vrot.lane.b32.xlu1 %v7870_v14, %s7236_s8  ;;  %4340 = vrot.lane.b32.xlu0 %v7872_v31, %s7236_s8  ;;  %v2763_v48 = vsel %vm207_vm0, %v2739_v42, 0 }
 0x149   : > { %6579 = vmatprep.subr.msk.bf16.mxu0 %vm207_vm0, %v2738_v37  ;;  %6578 = vmatmul.mubr.msk.bf16.vlgmr.msra.gmra.mrb[0].mxu1 %vm203_vm1, %v6574_v13 }
 0x14a   : > { %2851 = vmatpush1.bf16.msra.mxu0 %v2757_v40  ;;  %v2943_v43 = vpop.permute.xlu1 %2942  ;;  %v2731_v44 = vpop.permute.xlu0 %2730  ;;  %2923 = vmatprep.mubr.bf16.mxu1 %v7218_v0 }
 0x14b   : > { %v2740_v45 = vsel %vm2732_vm12, %v2729_v35, %v2731_v44  ;;  %v6601_v44 = vld [vmem:[%s8491_s1 + $0x38] sm:$0xf]  ;;  %vm6180_vm12 = vcmask 277504  }
 0x14c   : > { %4346 = vrot.lane.b32.xlu1 %v7885_v38, %s7236_s8  ;;  %4344 = vrot.lane.b32.xlu0 %v7887_v39, %s7236_s8 }
 0x14d   : > { %6581 = vmatprep.subr.msk.bf16.mxu1 %vm207_vm0, %v2740_v45  ;;  %6580 = vmatmul.mubr.msk.bf16.vlgmr.msra.gmra.mrb[4].mxu0 %vm203_vm1, %v6574_v13 }
 0x14e   : > { %2892 = vmatpush1.bf16.msra.mxu1 %v2763_v48  ;;  %v2947_v49 = vpop.permute.xlu1 %2946  ;;  %v2945_v18 = vpop.permute.xlu0 %2944  ;;  %3028 = vmatprep.mubr.bf16.mxu0 %v7218_v0 }
 0x14f   : > { %v2961_v50 = vsel %vm2960_vm13, %v2943_v43, %v2945_v18  ;;  %v2962_v51 = vsel %vm2960_vm13, %v2945_v18, %v2947_v49 }
 0x150   : > { %4350 = vrot.lane.b32.xlu1 %v7900_v46, %s7236_s8  ;;  %4348 = vrot.lane.b32.xlu0 %v7902_v47, %s7236_s8  ;;  %v2973_v52 = vsel %vm207_vm0, %v2961_v50, 0 }
 0x151   : > { %6584 = vmatprep.subr.msk.bf16.mxu0 %vm207_vm0, %v2962_v51  ;;  %6582 = vmatmul.mubr.msk.bf16.vlgmr.msra.gmra.mrb[4].mxu1 %vm203_vm1, %v6574_v13 }
 0x152   : > { %2997 = vmatpush1.bf16.msra.mxu0 %v2973_v52  ;;  %v2951_v55 = vpop.permute.xlu1 %2950  ;;  %v2949_v56 = vpop.permute.xlu0 %2948  ;;  %3069 = vmatprep.mubr.bf16.mxu1 %v7218_v0 }
 0x153   : > { %v2963_v58 = vsel %vm2960_vm13, %v2947_v49, %v2949_v56  ;;  %v2964_v59 = vsel %vm2960_vm13, %v2949_v56, %v2951_v55 }
 0x154   : > { %4354 = vrot.lane.b32.xlu1 %v7916_v53, %s7236_s8  ;;  %4352 = vrot.lane.b32.xlu0 %v7918_v54, %s7236_s8  ;;  %v2979_v60 = vsel %vm207_vm0, %v2963_v58, 0 }
 0x155   : > { %6586 = vmatprep.subr.msk.bf16.mxu1 %vm207_vm0, %v2964_v59  ;;  %6585 = vmatmul.mubr.msk.bf16.vlgmr.msra.gmra.mrb[0].mxu0 %vm203_vm1, %v6583_v57 }
 0x156   : > { %3038 = vmatpush1.bf16.msra.mxu1 %v2979_v60  ;;  %v2955_v61 = vpop.permute.xlu1 %2954  ;;  %v2953_v62 = vpop.permute.xlu0 %2952  ;;  %3110 = vmatprep.mubr.bf16.mxu0 %v7218_v0 }
 0x157   : > { %v2965_v63 = vsel %vm2960_vm13, %v2951_v55, %v2953_v62  ;;  %v2966_v1 = vsel %vm2960_vm13, %v2953_v62, %v2955_v61 }
 0x158   : > { %4568 = vrot.lane.b32.xlu1 %v7872_v31, %s7237_s17  ;;  %4566 = vrot.lane.b32.xlu0 %v7857_v11, %s7237_s17  ;;  %v2985_v2 = vsel %vm207_vm0, %v2965_v63, 0 }
 0x159   : > { %6588 = vmatprep.subr.msk.bf16.mxu0 %vm207_vm0, %v2966_v1  ;;  %6587 = vmatmul.mubr.msk.bf16.vlgmr.msra.gmra.mrb[0].mxu1 %vm203_vm1, %v6583_v57 }
 0x15a   : > { %3079 = vmatpush1.bf16.msra.mxu0 %v2985_v2  ;;  %v2959_v5 = vpop.permute.xlu1 %2958  ;;  %v2957_v6 = vpop.permute.xlu0 %2956  ;;  %3151 = vmatprep.mubr.bf16.mxu1 %v7218_v0 }
 0x15b   : > { %v2967_v9 = vsel %vm2960_vm13, %v2955_v61, %v2957_v6  ;;  %v2968_v10 = vsel %vm2960_vm13, %v2957_v6, %v2959_v5 }
 0x15c   : > { %4572 = vrot.lane.b32.xlu1 %v7887_v39, %s7237_s17  ;;  %4570 = vrot.lane.b32.xlu0 %v7870_v14, %s7237_s17  ;;  %v2991_v15 = vsel %vm207_vm0, %v2967_v9, 0 }
 0x15d   : > { %6590 = vmatprep.subr.msk.bf16.mxu1 %vm207_vm0, %v2968_v10  ;;  %6589 = vmatmul.mubr.msk.bf16.vlgmr.msra.gmra.mrb[4].mxu0 %vm203_vm1, %v6583_v57 }
 0x15e   : > { %3120 = vmatpush1.bf16.msra.mxu1 %v2991_v15  ;;  %v3173_v16 = vpop.permute.xlu1 %3172  ;;  %v3171_v17 = vpop.permute.xlu0 %3170  ;;  %3256 = vmatprep.mubr.bf16.mxu0 %v7218_v0 }
 0x15f   : > { %v3189_v19 = vsel %vm3188_vm14, %v3171_v17, %v3173_v16 }
 0x160   : > { %4576 = vrot.lane.b32.xlu1 %v7902_v47, %s7237_s17  ;;  %4574 = vrot.lane.b32.xlu0 %v7885_v38, %s7237_s17  ;;  %v3201_v8 = vsel %vm207_vm0, %v3189_v19, 0 }
 0x161   : > { %6591 = vmatmul.mubr.msk.bf16.vlgmr.msra.gmra.mrb[4].mxu1 %vm203_vm1, %v6583_v57 }
 0x162   : > { %v3177_v20 = vpop.permute.xlu1 %3176  ;;  %v3175_v21 = vpop.permute.xlu0 %3174  ;;  %3297 = vmatprep.mubr.bf16.mxu1 %v7218_v0 }
 0x163   : > { %v3190_v4 = vsel %vm3188_vm14, %v3173_v16, %v3175_v21  ;;  %v3191_v22 = vsel %vm3188_vm14, %v3175_v21, %v3177_v20  ;;  %v6610_v16 = vld [vmem:[%s8491_s1 + $0x3c] sm:$0xf] }
 0x164   : > { %4580 = vrot.lane.b32.xlu1 %v7918_v54, %s7237_s17  ;;  %4578 = vrot.lane.b32.xlu0 %v7900_v46, %s7237_s17  ;;  %v3207_v25 = vsel %vm207_vm0, %v3191_v22, 0 }
 0x165   : > { %6593 = vmatprep.subr.msk.bf16.mxu0 %vm207_vm0, %v3190_v4 }
 0x166   : > { %3225 = vmatpush1.bf16.msra.mxu0 %v3201_v8  ;;  %v3181_v3 = vpop.permute.xlu1 %3180  ;;  %v3179_v7 = vpop.permute.xlu0 %3178 }
 0x167   : > { %v3192_v24 = vsel %vm3188_vm14, %v3177_v20, %v3179_v7  ;;  %v3193_v12 = vsel %vm3188_vm14, %v3179_v7, %v3181_v3 }
 0x168   : > { %4794 = vrot.lane.b32.xlu1 %v7857_v11, %s7238_s15  ;;  %4582 = vrot.lane.b32.xlu0 %v7916_v53, %s7237_s17  ;;  %v3213_v29 = vsel %vm207_vm0, %v3193_v12, 0 }
 0x169   : > { %6595 = vmatprep.subr.msk.bf16.mxu1 %vm207_vm0, %v3192_v24  ;;  %6594 = vmatmul.mubr.msk.bf16.vlgmr.msra.gmra.mrb[0].mxu0 %vm203_vm1, %v6592_v23 }
 0x16a   : > { %3266 = vmatpush1.bf16.msra.mxu1 %v3207_v25  ;;  %v3185_v26 = vpop.permute.xlu1 %3184  ;;  %v3183_v27 = vpop.permute.xlu0 %3182  ;;  %3338 = vmatprep.mubr.bf16.mxu0 %v7218_v0 }
 0x16b   : > { %v3194_v28 = vsel %vm3188_vm14, %v3181_v3, %v3183_v27  ;;  %v3195_v13 = vsel %vm3188_vm14, %v3183_v27, %v3185_v26 }
 0x16c   : > { %4798 = vrot.lane.b32.xlu1 %v7870_v14, %s7238_s15  ;;  %4796 = vrot.lane.b32.xlu0 %v7872_v31, %s7238_s15  ;;  %v3219_v34 = vsel %vm207_vm0, %v3195_v13, 0 }
 0x16d   : > { %6597 = vmatprep.subr.msk.bf16.mxu0 %vm207_vm0, %v3194_v28  ;;  %6596 = vmatmul.mubr.msk.bf16.vlgmr.msra.gmra.mrb[0].mxu1 %vm203_vm1, %v6592_v23 }
 0x16e   : > { %3307 = vmatpush1.bf16.msra.mxu0 %v3213_v29  ;;  %v3399_v30 = vpop.permute.xlu1 %3398  ;;  %v3187_v32 = vpop.permute.xlu0 %3186  ;;  %3379 = vmatprep.mubr.bf16.mxu1 %v7218_v0 }
 0x16f   : > { %v3196_v33 = vsel %vm3188_vm14, %v3185_v26, %v3187_v32  ;;  %v6619_v32 = vld [vmem:[%s8491_s1 + $0x40] sm:$0xf] }
 0x170   : > { %4802 = vrot.lane.b32.xlu1 %v7885_v38, %s7238_s15  ;;  %4800 = vrot.lane.b32.xlu0 %v7887_v39, %s7238_s15 }
 0x171   : > { %6599 = vmatprep.subr.msk.bf16.mxu1 %vm207_vm0, %v3196_v33  ;;  %6598 = vmatmul.mubr.msk.bf16.vlgmr.msra.gmra.mrb[4].mxu0 %vm203_vm1, %v6592_v23 }
 0x172   : > { %3348 = vmatpush1.bf16.msra.mxu1 %v3219_v34  ;;  %v3403_v35 = vpop.permute.xlu1 %3402  ;;  %v3401_v36 = vpop.permute.xlu0 %3400  ;;  %3484 = vmatprep.mubr.bf16.mxu0 %v7218_v0 }
 0x173   : > { %v3417_v37 = vsel %vm3416_vm15, %v3399_v30, %v3401_v36  ;;  %v3418_v40 = vsel %vm3416_vm15, %v3401_v36, %v3403_v35 }
 0x174   : > { %4806 = vrot.lane.b32.xlu1 %v7900_v46, %s7238_s15  ;;  %4804 = vrot.lane.b32.xlu0 %v7902_v47, %s7238_s15  ;;  %v3429_v41 = vsel %vm207_vm0, %v3417_v37, 0 }
 0x175   : > { %6602 = vmatprep.subr.msk.bf16.mxu0 %vm207_vm0, %v3418_v40  ;;  %6600 = vmatmul.mubr.msk.bf16.vlgmr.msra.gmra.mrb[4].mxu1 %vm203_vm1, %v6592_v23 }
 0x176   : > { %3453 = vmatpush1.bf16.msra.mxu0 %v3429_v41  ;;  %v3407_v42 = vpop.permute.xlu1 %3406  ;;  %v3405_v43 = vpop.permute.xlu0 %3404  ;;  %3525 = vmatprep.mubr.bf16.mxu1 %v7218_v0 }
 0x177   : > { %v3419_v45 = vsel %vm3416_vm15, %v3403_v35, %v3405_v43  ;;  %v3420_v48 = vsel %vm3416_vm15, %v3405_v43, %v3407_v42 }
 0x178   : > { %4810 = vrot.lane.b32.xlu1 %v7916_v53, %s7238_s15  ;;  %4808 = vrot.lane.b32.xlu0 %v7918_v54, %s7238_s15  ;;  %v3435_v49 = vsel %vm207_vm0, %v3419_v45, 0 }
 0x179   : > { %6604 = vmatprep.subr.msk.bf16.mxu1 %vm207_vm0, %v3420_v48  ;;  %6603 = vmatmul.mubr.msk.bf16.vlgmr.msra.gmra.mrb[0].mxu0 %vm203_vm1, %v6601_v44 }
 0x17a   : > { %3494 = vmatpush1.bf16.msra.mxu1 %v3435_v49  ;;  %v3411_v18 = vpop.permute.xlu1 %3410  ;;  %v3409_v50 = vpop.permute.xlu0 %3408  ;;  %3566 = vmatprep.mubr.bf16.mxu0 %v7218_v0 }
 0x17b   : > { %v3421_v51 = vsel %vm3416_vm15, %v3407_v42, %v3409_v50  ;;  %v3422_v52 = vsel %vm3416_vm15, %v3409_v50, %v3411_v18 }
 0x17c   : > { %5024 = vrot.lane.b32.xlu1 %v7872_v31, %s7239_s19  ;;  %5022 = vrot.lane.b32.xlu0 %v7857_v11, %s7239_s19  ;;  %v3441_v55 = vsel %vm207_vm0, %v3421_v51, 0 }
 0x17d   : > { %6606 = vmatprep.subr.msk.bf16.mxu0 %vm207_vm0, %v3422_v52  ;;  %6605 = vmatmul.mubr.msk.bf16.vlgmr.msra.gmra.mrb[0].mxu1 %vm203_vm1, %v6601_v44 }
 0x17e   : > { %3535 = vmatpush1.bf16.msra.mxu0 %v3441_v55  ;;  %v3415_v56 = vpop.permute.xlu1 %3414  ;;  %v3413_v57 = vpop.permute.xlu0 %3412  ;;  %3607 = vmatprep.mubr.bf16.mxu1 %v7218_v0 }
 0x17f   : > { %v3423_v58 = vsel %vm3416_vm15, %v3411_v18, %v3413_v57  ;;  %v3424_v59 = vsel %vm3416_vm15, %v3413_v57, %v3415_v56 }
 0x180   : > { %5028 = vrot.lane.b32.xlu1 %v7887_v39, %s7239_s19  ;;  %5026 = vrot.lane.b32.xlu0 %v7870_v14, %s7239_s19  ;;  %v3447_v60 = vsel %vm207_vm0, %v3423_v58, 0 }
 0x181   : > { %6608 = vmatprep.subr.msk.bf16.mxu1 %vm207_vm0, %v3424_v59  ;;  %6607 = vmatmul.mubr.msk.bf16.vlgmr.msra.gmra.mrb[4].mxu0 %vm203_vm1, %v6601_v44 }
 0x182   : > { %3576 = vmatpush1.bf16.msra.mxu1 %v3447_v60  ;;  %v3629_v61 = vpop.permute.xlu1 %3628  ;;  %v3627_v62 = vpop.permute.xlu0 %3626  ;;  %3712 = vmatprep.mubr.bf16.mxu0 %v7218_v0 }
 0x183   : > { %v3645_v63 = vsel %vm203_vm1, %v3627_v62, %v3629_v61 }
 0x184   : > { %5032 = vrot.lane.b32.xlu1 %v7902_v47, %s7239_s19  ;;  %5030 = vrot.lane.b32.xlu0 %v7885_v38, %s7239_s19  ;;  %v3657_v6 = vsel %vm207_vm0, %v3645_v63, 0 }
 0x185   : > { %6609 = vmatmul.mubr.msk.bf16.vlgmr.msra.gmra.mrb[4].mxu1 %vm203_vm1, %v6601_v44 }
 0x186   : > { %v3633_v1 = vpop.permute.xlu1 %3632  ;;  %v3631_v2 = vpop.permute.xlu0 %3630  ;;  %3753 = vmatprep.mubr.bf16.mxu1 %v7218_v0 }
 0x187   : > { %v3646_v5 = vsel %vm203_vm1, %v3629_v61, %v3631_v2  ;;  %v3647_v9 = vsel %vm203_vm1, %v3631_v2, %v3633_v1  ;;  %v6628_v61 = vld [vmem:[%s8491_s1 + $0x44] sm:$0xf] }
 0x188   : > { %5036 = vrot.lane.b32.xlu1 %v7918_v54, %s7239_s19  ;;  %5034 = vrot.lane.b32.xlu0 %v7900_v46, %s7239_s19  ;;  %v3663_v19 = vsel %vm207_vm0, %v3647_v9, 0 }
 0x189   : > { %6611 = vmatprep.subr.msk.bf16.mxu0 %vm207_vm0, %v3646_v5 }
 0x18a   : > { %3681 = vmatpush1.bf16.msra.mxu0 %v3657_v6  ;;  %v3637_v10 = vpop.permute.xlu1 %3636  ;;  %v3635_v15 = vpop.permute.xlu0 %3634 }
 0x18b   : > { %v3648_v17 = vsel %vm203_vm1, %v3633_v1, %v3635_v15  ;;  %v3649_v20 = vsel %vm203_vm1, %v3635_v15, %v3637_v10 }
 0x18c   : > { %5250 = vrot.lane.b32.xlu1 %v7857_v11, %s7240_s22  ;;  %5038 = vrot.lane.b32.xlu0 %v7916_v53, %s7239_s19  ;;  %v3669_v22 = vsel %vm207_vm0, %v3649_v20, 0 }
 0x18d   : > { %6613 = vmatprep.subr.msk.bf16.mxu1 %vm207_vm0, %v3648_v17  ;;  %6612 = vmatmul.mubr.msk.bf16.vlgmr.msra.gmra.mrb[0].mxu0 %vm203_vm1, %v6610_v16 }
 0x18e   : > { %3722 = vmatpush1.bf16.msra.mxu1 %v3663_v19  ;;  %v3641_v21 = vpop.permute.xlu1 %3640  ;;  %v3639_v4 = vpop.permute.xlu0 %3638  ;;  %3794 = vmatprep.mubr.bf16.mxu0 %v7218_v0 }
 0x18f   : > { %v3650_v8 = vsel %vm203_vm1, %v3637_v10, %v3639_v4  ;;  %v3651_v3 = vsel %vm203_vm1, %v3639_v4, %v3641_v21 }
 0x190   : > { %5254 = vrot.lane.b32.xlu1 %v7870_v14, %s7240_s22  ;;  %5252 = vrot.lane.b32.xlu0 %v7872_v31, %s7240_s22  ;;  %v3675_v25 = vsel %vm207_vm0, %v3651_v3, 0 }
 0x191   : > { %6615 = vmatprep.subr.msk.bf16.mxu0 %vm207_vm0, %v3650_v8  ;;  %6614 = vmatmul.mubr.msk.bf16.vlgmr.msra.gmra.mrb[0].mxu1 %vm203_vm1, %v6610_v16 }
 0x192   : > { %3763 = vmatpush1.bf16.msra.mxu0 %v3669_v22  ;;  %v3855_v7 = vpop.permute.xlu1 %3854  ;;  %v3643_v23 = vpop.permute.xlu0 %3642  ;;  %3835 = vmatprep.mubr.bf16.mxu1 %v7218_v0 }
 0x193   : > { %v3652_v24 = vsel %vm203_vm1, %v3641_v21, %v3643_v23  ;;  %v6637_v23 = vld [vmem:[%s8491_s1 + $0x48] sm:$0xf] }
 0x194   : > { %5258 = vrot.lane.b32.xlu1 %v7885_v38, %s7240_s22  ;;  %5256 = vrot.lane.b32.xlu0 %v7887_v39, %s7240_s22 }
 0x195   : > { %6617 = vmatprep.subr.msk.bf16.mxu1 %vm207_vm0, %v3652_v24  ;;  %6616 = vmatmul.mubr.msk.bf16.vlgmr.msra.gmra.mrb[4].mxu0 %vm203_vm1, %v6610_v16 }
 0x196   : > { %3804 = vmatpush1.bf16.msra.mxu1 %v3675_v25  ;;  %v3859_v12 = vpop.permute.xlu1 %3858  ;;  %v3857_v26 = vpop.permute.xlu0 %3856  ;;  %3940 = vmatprep.mubr.bf16.mxu0 %v7218_v0 }
 0x197   : > { %v3873_v27 = vsel %vm3872_vm2, %v3855_v7, %v3857_v26  ;;  %v3874_v28 = vsel %vm3872_vm2, %v3857_v26, %v3859_v12 }
 0x198   : > { %5262 = vrot.lane.b32.xlu1 %v7900_v46, %s7240_s22  ;;  %5260 = vrot.lane.b32.xlu0 %v7902_v47, %s7240_s22  ;;  %v3885_v29 = vsel %vm207_vm0, %v3873_v27, 0 }
 0x199   : > { %6620 = vmatprep.subr.msk.bf16.mxu0 %vm207_vm0, %v3874_v28  ;;  %6618 = vmatmul.mubr.msk.bf16.vlgmr.msra.gmra.mrb[4].mxu1 %vm203_vm1, %v6610_v16 }
 0x19a   : > { %3909 = vmatpush1.bf16.msra.mxu0 %v3885_v29  ;;  %v3863_v13 = vpop.permute.xlu1 %3862  ;;  %v3861_v30 = vpop.permute.xlu0 %3860  ;;  %3981 = vmatprep.mubr.bf16.mxu1 %v7218_v0 }
 0x19b   : > { %v3875_v33 = vsel %vm3872_vm2, %v3859_v12, %v3861_v30  ;;  %v3876_v34 = vsel %vm3872_vm2, %v3861_v30, %v3863_v13 }
 0x19c   : > { %v3891_v35 = vsel %vm207_vm0, %v3875_v33, 0  ;;  %5266 = vrot.lane.b32.xlu1 %v7916_v53, %s7240_s22  ;;  %5264 = vrot.lane.b32.xlu0 %v7918_v54, %s7240_s22 }
 0x19d   : > { %6622 = vmatprep.subr.msk.bf16.mxu1 %vm207_vm0, %v3876_v34  ;;  %6621 = vmatmul.mubr.msk.bf16.vlgmr.msra.gmra.mrb[0].mxu0 %vm203_vm1, %v6619_v32 }
 0x19e   : > { %3950 = vmatpush1.bf16.msra.mxu1 %v3891_v35  ;;  %v3867_v36 = vpop.permute.xlu1 %3866  ;;  %v3865_v37 = vpop.permute.xlu0 %3864  ;;  %4022 = vmatprep.mubr.bf16.mxu0 %v7218_v0 }
 0x19f   : > { %v3877_v40 = vsel %vm3872_vm2, %v3863_v13, %v3865_v37  ;;  %v3878_v41 = vsel %vm3872_vm2, %v3865_v37, %v3867_v36 }
 0x1a0   : > { %v3897_v42 = vsel %vm207_vm0, %v3877_v40, 0  ;;  %5480 = vrot.lane.b32.xlu1 %v7872_v31, %s7241_s25  ;;  %5478 = vrot.lane.b32.xlu0 %v7857_v11, %s7241_s25 }
 0x1a1   : > { %6624 = vmatprep.subr.msk.bf16.mxu0 %vm207_vm0, %v3878_v41  ;;  %6623 = vmatmul.mubr.msk.bf16.vlgmr.msra.gmra.mrb[0].mxu1 %vm203_vm1, %v6619_v32 }
 0x1a2   : > { %3991 = vmatpush1.bf16.msra.mxu0 %v3897_v42  ;;  %v3871_v43 = vpop.permute.xlu1 %3870  ;;  %v3869_v44 = vpop.permute.xlu0 %3868  ;;  %4063 = vmatprep.mubr.bf16.mxu1 %v7218_v0 }
 0x1a3   : > { %v3879_v45 = vsel %vm3872_vm2, %v3867_v36, %v3869_v44  ;;  %v3880_v48 = vsel %vm3872_vm2, %v3869_v44, %v3871_v43 }
 0x1a4   : > { %v3903_v49 = vsel %vm207_vm0, %v3879_v45, 0  ;;  %5484 = vrot.lane.b32.xlu1 %v7887_v39, %s7241_s25  ;;  %5482 = vrot.lane.b32.xlu0 %v7870_v14, %s7241_s25 }
 0x1a5   : > { %6626 = vmatprep.subr.msk.bf16.mxu1 %vm207_vm0, %v3880_v48  ;;  %6625 = vmatmul.mubr.msk.bf16.vlgmr.msra.gmra.mrb[4].mxu0 %vm203_vm1, %v6619_v32 }
 0x1a6   : > { %4032 = vmatpush1.bf16.msra.mxu1 %v3903_v49  ;;  %v4085_v18 = vpop.permute.xlu1 %4084  ;;  %v4083_v50 = vpop.permute.xlu0 %4082  ;;  %4168 = vmatprep.mubr.bf16.mxu0 %v7218_v0 }
 0x1a7   : > { %v4101_v51 = vsel %vm4100_vm3, %v4083_v50, %v4085_v18 }
 0x1a8   : > { %5488 = vrot.lane.b32.xlu1 %v7902_v47, %s7241_s25  ;;  %5486 = vrot.lane.b32.xlu0 %v7885_v38, %s7241_s25  ;;  %v4113_v57 = vsel %vm207_vm0, %v4101_v51, 0 }
 0x1a9   : > { %6627 = vmatmul.mubr.msk.bf16.vlgmr.msra.gmra.mrb[4].mxu1 %vm203_vm1, %v6619_v32 }
 0x1aa   : > { %v4089_v52 = vpop.permute.xlu1 %4088  ;;  %v4087_v55 = vpop.permute.xlu0 %4086  ;;  %4209 = vmatprep.mubr.bf16.mxu1 %v7218_v0 }
 0x1ab   : > { %v4102_v56 = vsel %vm4100_vm3, %v4085_v18, %v4087_v55  ;;  %v4103_v58 = vsel %vm4100_vm3, %v4087_v55, %v4089_v52  ;;  %v6655_v18 = vld [vmem:[%s8491_s1 + $0x4c] sm:$0xf] }
 0x1ac   : > { %5492 = vrot.lane.b32.xlu1 %v7918_v54, %s7241_s25  ;;  %5490 = vrot.lane.b32.xlu0 %v7900_v46, %s7241_s25  ;;  %v4119_v63 = vsel %vm207_vm0, %v4103_v58, 0 }
 0x1ad   : > { %6629 = vmatprep.subr.msk.bf16.mxu0 %vm207_vm0, %v4102_v56 }
 0x1ae   : > { %4137 = vmatpush1.bf16.msra.mxu0 %v4113_v57  ;;  %v4093_v59 = vpop.permute.xlu1 %4092  ;;  %v4091_v60 = vpop.permute.xlu0 %4090 }
 0x1af   : > { %v4104_v62 = vsel %vm4100_vm3, %v4089_v52, %v4091_v60  ;;  %v4105_v1 = vsel %vm4100_vm3, %v4091_v60, %v4093_v59 }
 0x1b0   : > { %5706 = vrot.lane.b32.xlu1 %v7857_v11, %s7242_s28  ;;  %5494 = vrot.lane.b32.xlu0 %v7916_v53, %s7241_s25  ;;  %v4125_v9 = vsel %vm207_vm0, %v4105_v1, 0 }
 0x1b1   : > { %6631 = vmatprep.subr.msk.bf16.mxu1 %vm207_vm0, %v4104_v62  ;;  %6630 = vmatmul.mubr.msk.bf16.vlgmr.msra.gmra.mrb[0].mxu0 %vm203_vm1, %v6628_v61 }
 0x1b2   : > { %4178 = vmatpush1.bf16.msra.mxu1 %v4119_v63  ;;  %v4097_v2 = vpop.permute.xlu1 %4096  ;;  %v4095_v5 = vpop.permute.xlu0 %4094  ;;  %4250 = vmatprep.mubr.bf16.mxu0 %v7218_v0 }
 0x1b3   : > { %v4106_v6 = vsel %vm4100_vm3, %v4093_v59, %v4095_v5  ;;  %v4107_v10 = vsel %vm4100_vm3, %v4095_v5, %v4097_v2  ;;  %v6664_v5 = vld [vmem:[%s8491_s1 + $0x50] sm:$0xf] }
 0x1b4   : > { %5710 = vrot.lane.b32.xlu1 %v7870_v14, %s7242_s28  ;;  %5708 = vrot.lane.b32.xlu0 %v7872_v31, %s7242_s28  ;;  %v4131_v19 = vsel %vm207_vm0, %v4107_v10, 0 }
 0x1b5   : > { %6633 = vmatprep.subr.msk.bf16.mxu0 %vm207_vm0, %v4106_v6  ;;  %6632 = vmatmul.mubr.msk.bf16.vlgmr.msra.gmra.mrb[0].mxu1 %vm203_vm1, %v6628_v61 }
 0x1b6   : > { %4219 = vmatpush1.bf16.msra.mxu0 %v4125_v9  ;;  %v4339_v15 = vpop.permute.xlu1 %4338  ;;  %v4099_v16 = vpop.permute.xlu0 %4098  ;;  %4291 = vmatprep.mubr.bf16.mxu1 %v7218_v0 }
 0x1b7   : > { %v4108_v17 = vsel %vm4100_vm3, %v4097_v2, %v4099_v16 }
 0x1b8   : > { %5714 = vrot.lane.b32.xlu1 %v7885_v38, %s7242_s28  ;;  %5712 = vrot.lane.b32.xlu0 %v7887_v39, %s7242_s28 }
 0x1b9   : > { %6635 = vmatprep.subr.msk.bf16.mxu1 %vm207_vm0, %v4108_v17  ;;  %6634 = vmatmul.mubr.msk.bf16.vlgmr.msra.gmra.mrb[4].mxu0 %vm203_vm1, %v6628_v61 }
 0x1ba   : > { %4260 = vmatpush1.bf16.msra.mxu1 %v4131_v19  ;;  %v4343_v20 = vpop.permute.xlu1 %4342  ;;  %v4341_v21 = vpop.permute.xlu0 %4340  ;;  %4424 = vmatprep.mubr.bf16.mxu0 %v7218_v0 }
 0x1bb   : > { %v4357_v4 = vsel %vm4356_vm4, %v4339_v15, %v4341_v21  ;;  %v4358_v8 = vsel %vm4356_vm4, %v4341_v21, %v4343_v20 }
 0x1bc   : > { %v4369_v22 = vsel %vm207_vm0, %v4357_v4, 0  ;;  %5718 = vrot.lane.b32.xlu1 %v7900_v46, %s7242_s28  ;;  %5716 = vrot.lane.b32.xlu0 %v7902_v47, %s7242_s28 }
 0x1bd   : > { %6647 = vmatprep.subr.msk.bf16.mxu0 %vm207_vm0, %v4358_v8  ;;  %6636 = vmatmul.mubr.msk.bf16.vlgmr.msra.gmra.mrb[4].mxu1 %vm203_vm1, %v6628_v61 }
 0x1be   : > { %4393 = vmatpush1.bf16.msra.mxu0 %v4369_v22  ;;  %v4347_v3 = vpop.permute.xlu1 %4346  ;;  %v4345_v7 = vpop.permute.xlu0 %4344  ;;  %4465 = vmatprep.mubr.bf16.mxu1 %v7218_v0 }
 0x1bf   : > { %v4359_v24 = vsel %vm4356_vm4, %v4343_v20, %v4345_v7  ;;  %v4360_v25 = vsel %vm4356_vm4, %v4345_v7, %v4347_v3 }
 0x1c0   : > { %v4375_v12 = vsel %vm207_vm0, %v4359_v24, 0  ;;  %5722 = vrot.lane.b32.xlu1 %v7916_v53, %s7242_s28  ;;  %5720 = vrot.lane.b32.xlu0 %v7918_v54, %s7242_s28 }
 0x1c1   : > { %6649 = vmatprep.subr.msk.bf16.mxu1 %vm207_vm0, %v4360_v25  ;;  %6648 = vmatmul.mubr.msk.bf16.vlgmr.msra.gmra.mrb[0].mxu0 %vm203_vm1, %v6637_v23 }
 0x1c2   : > { %4434 = vmatpush1.bf16.msra.mxu1 %v4375_v12  ;;  %v4351_v26 = vpop.permute.xlu1 %4350  ;;  %v4349_v27 = vpop.permute.xlu0 %4348  ;;  %4506 = vmatprep.mubr.bf16.mxu0 %v7218_v0 }
 0x1c3   : > { %v4361_v28 = vsel %vm4356_vm4, %v4347_v3, %v4349_v27  ;;  %v4362_v29 = vsel %vm4356_vm4, %v4349_v27, %v4351_v26 }
 0x1c4   : > { %v4381_v13 = vsel %vm207_vm0, %v4361_v28, 0  ;;  %5936 = vrot.lane.b32.xlu1 %v7872_v31, %s7243_s4  ;;  %5934 = vrot.lane.b32.xlu0 %v7857_v11, %s7243_s4 }
 0x1c5   : > { %6651 = vmatprep.subr.msk.bf16.mxu0 %vm207_vm0, %v4362_v29  ;;  %6650 = vmatmul.mubr.msk.bf16.vlgmr.msra.gmra.mrb[0].mxu1 %vm203_vm1, %v6637_v23 }
 0x1c6   : > { %4475 = vmatpush1.bf16.msra.mxu0 %v4381_v13  ;;  %v4355_v30 = vpop.permute.xlu1 %4354  ;;  %v4353_v32 = vpop.permute.xlu0 %4352  ;;  %4547 = vmatprep.mubr.bf16.mxu1 %v7218_v0 }
 0x1c7   : > { %v4363_v33 = vsel %vm4356_vm4, %v4351_v26, %v4353_v32  ;;  %v4364_v34 = vsel %vm4356_vm4, %v4353_v32, %v4355_v30  ;;  %v6673_v26 = vld [vmem:[%s8491_s1 + $0x54] sm:$0xf] }
 0x1c8   : > { %v4387_v35 = vsel %vm207_vm0, %v4363_v33, 0  ;;  %5940 = vrot.lane.b32.xlu1 %v7887_v39, %s7243_s4  ;;  %5938 = vrot.lane.b32.xlu0 %v7870_v14, %s7243_s4 }
 0x1c9   : > { %6653 = vmatprep.subr.msk.bf16.mxu1 %vm207_vm0, %v4364_v34  ;;  %6652 = vmatmul.mubr.msk.bf16.vlgmr.msra.gmra.mrb[4].mxu0 %vm203_vm1, %v6637_v23 }
 0x1ca   : > { %4516 = vmatpush1.bf16.msra.mxu1 %v4387_v35  ;;  %v4569_v36 = vpop.permute.xlu1 %4568  ;;  %v4567_v37 = vpop.permute.xlu0 %4566  ;;  %4652 = vmatprep.mubr.bf16.mxu0 %v7218_v0 }
 0x1cb   : > { %v4585_v40 = vsel %vm4584_vm5, %v4567_v37, %v4569_v36 }
 0x1cc   : > { %5944 = vrot.lane.b32.xlu1 %v7902_v47, %s7243_s4  ;;  %5942 = vrot.lane.b32.xlu0 %v7885_v38, %s7243_s4  ;;  %v4597_v44 = vsel %vm207_vm0, %v4585_v40, 0 }
 0x1cd   : > { %6654 = vmatmul.mubr.msk.bf16.vlgmr.msra.gmra.mrb[4].mxu1 %vm203_vm1, %v6637_v23 }
 0x1ce   : > { %v4573_v41 = vpop.permute.xlu1 %4572  ;;  %v4571_v42 = vpop.permute.xlu0 %4570  ;;  %4693 = vmatprep.mubr.bf16.mxu1 %v7218_v0 }
 0x1cf   : > { %v4586_v43 = vsel %vm4584_vm5, %v4569_v36, %v4571_v42  ;;  %v4587_v45 = vsel %vm4584_vm5, %v4571_v42, %v4573_v41 }
 0x1d0   : > { %5948 = vrot.lane.b32.xlu1 %v7918_v54, %s7243_s4  ;;  %5946 = vrot.lane.b32.xlu0 %v7900_v46, %s7243_s4  ;;  %v4603_v51 = vsel %vm207_vm0, %v4587_v45, 0 }
 0x1d1   : > { %6656 = vmatprep.subr.msk.bf16.mxu0 %vm207_vm0, %v4586_v43 }
 0x1d2   : > { %4621 = vmatpush1.bf16.msra.mxu0 %v4597_v44  ;;  %v4577_v48 = vpop.permute.xlu1 %4576  ;;  %v4575_v49 = vpop.permute.xlu0 %4574 }
 0x1d3   : > { %v4588_v50 = vsel %vm4584_vm5, %v4573_v41, %v4575_v49  ;;  %v4589_v52 = vsel %vm4584_vm5, %v4575_v49, %v4577_v48 }
 0x1d4   : > { %6162 = vrot.lane.b32.xlu1 %v7857_v11, %s7244_s7  ;;  %5950 = vrot.lane.b32.xlu0 %v7916_v53, %s7243_s4  ;;  %v4609_v11 = vsel %vm207_vm0, %v4589_v52, 0 }
 0x1d5   : > { %6658 = vmatprep.subr.msk.bf16.mxu1 %vm207_vm0, %v4588_v50  ;;  %6657 = vmatmul.mubr.msk.bf16.vlgmr.msra.gmra.mrb[0].mxu0 %vm203_vm1, %v6655_v18 }
 0x1d6   : > { %4662 = vmatpush1.bf16.msra.mxu1 %v4603_v51  ;;  %v4581_v55 = vpop.permute.xlu1 %4580  ;;  %v4579_v56 = vpop.permute.xlu0 %4578  ;;  %4734 = vmatprep.mubr.bf16.mxu0 %v7218_v0 }
 0x1d7   : > { %v4590_v57 = vsel %vm4584_vm5, %v4577_v48, %v4579_v56  ;;  %v4591_v58 = vsel %vm4584_vm5, %v4579_v56, %v4581_v55 }
 0x1d8   : > { %6166 = vrot.lane.b32.xlu1 %v7870_v14, %s7244_s7  ;;  %6164 = vrot.lane.b32.xlu0 %v7872_v31, %s7244_s7  ;;  %v4615_v14 = vsel %vm207_vm0, %v4591_v58, 0 }
 0x1d9   : > { %6660 = vmatprep.subr.msk.bf16.mxu0 %vm207_vm0, %v4590_v57  ;;  %6659 = vmatmul.mubr.msk.bf16.vlgmr.msra.gmra.mrb[0].mxu1 %vm203_vm1, %v6655_v18 }
 0x1da   : > { %4703 = vmatpush1.bf16.msra.mxu0 %v4609_v11  ;;  %v4795_v59 = vpop.permute.xlu1 %4794  ;;  %v4583_v60 = vpop.permute.xlu0 %4582  ;;  %4775 = vmatprep.mubr.bf16.mxu1 %v7218_v0 }
 0x1db   : > { %v4592_v61 = vsel %vm4584_vm5, %v4581_v55, %v4583_v60 }
 0x1dc   : > { %6170 = vrot.lane.b32.xlu1 %v7885_v38, %s7244_s7  ;;  %6168 = vrot.lane.b32.xlu0 %v7887_v39, %s7244_s7 }
 0x1dd   : > { %6662 = vmatprep.subr.msk.bf16.mxu1 %vm207_vm0, %v4592_v61  ;;  %6661 = vmatmul.mubr.msk.bf16.vlgmr.msra.gmra.mrb[4].mxu0 %vm203_vm1, %v6655_v18 }
 0x1de   : > { %4744 = vmatpush1.bf16.msra.mxu1 %v4615_v14  ;;  %v4799_v31 = vpop.permute.xlu1 %4798  ;;  %v4797_v62 = vpop.permute.xlu0 %4796  ;;  %4880 = vmatprep.mubr.bf16.mxu0 %v7218_v0 }
 0x1df   : > { %v4813_v63 = vsel %vm4812_vm6, %v4795_v59, %v4797_v62  ;;  %v4814_v1 = vsel %vm4812_vm6, %v4797_v62, %v4799_v31 }
 0x1e0   : > { %v4825_v38 = vsel %vm207_vm0, %v4813_v63, 0  ;;  %6174 = vrot.lane.b32.xlu1 %v7900_v46, %s7244_s7  ;;  %6172 = vrot.lane.b32.xlu0 %v7902_v47, %s7244_s7  ;;  %v172_v47 = vld [vmem:[%s8492_s2] sm:$0xff] }
 0x1e1   : > { %6665 = vmatprep.subr.msk.bf16.mxu0 %vm207_vm0, %v4814_v1  ;;  %6663 = vmatmul.mubr.msk.bf16.vlgmr.msra.gmra.mrb[4].mxu1 %vm203_vm1, %v6655_v18  ;;  %v6682_v18 = vld [vmem:[%s8491_s1 + $0x58] sm:$0xf] }
 0x1e2   : > { %4849 = vmatpush1.bf16.msra.mxu0 %v4825_v38  ;;  %v4803_v39 = vpop.permute.xlu1 %4802  ;;  %v4801_v2 = vpop.permute.xlu0 %4800  ;;  %4921 = vmatprep.mubr.bf16.mxu1 %v7218_v0 }
 0x1e3   : > { %v4815_v6 = vsel %vm4812_vm6, %v4799_v31, %v4801_v2  ;;  %v4816_v46 = vsel %vm4812_vm6, %v4801_v2, %v4803_v39 }
 0x1e4   : > { %v4831_v9 = vsel %vm207_vm0, %v4815_v6, 0  ;;  %6178 = vrot.lane.b32.xlu1 %v7916_v53, %s7244_s7  ;;  %6176 = vrot.lane.b32.xlu0 %v7918_v54, %s7244_s7 }
 0x1e5   : > { %6667 = vmatprep.subr.msk.bf16.mxu1 %vm207_vm0, %v4816_v46  ;;  %6666 = vmatmul.mubr.msk.bf16.vlgmr.msra.gmra.mrb[0].mxu0 %vm203_vm1, %v6664_v5 }
 0x1e6   : > { %4890 = vmatpush1.bf16.msra.mxu1 %v4831_v9  ;;  %v4807_v10 = vpop.permute.xlu1 %4806  ;;  %v4805_v15 = vpop.permute.xlu0 %4804  ;;  %4962 = vmatprep.mubr.bf16.mxu0 %v7218_v0 }
 0x1e7   : > { %v4817_v16 = vsel %vm4812_vm6, %v4803_v39, %v4805_v15  ;;  %v4818_v53 = vsel %vm4812_vm6, %v4805_v15, %v4807_v10 }
 0x1e8   : > { %v4837_v17 = vsel %vm207_vm0, %v4817_v16, 0  ;;  %6669 = vmatprep.subr.msk.bf16.mxu0 %vm207_vm0, %v4818_v53  ;;  %175 = vperm.xlu0 %7190, %v172_v47   ;;  %v6691_v47 = vld [vmem:[%s8491_s1 + $0x5c] sm:$0xf] }
 0x1e9   : > { %4931 = vmatpush1.bf16.msra.mxu0 %v4837_v17  ;;  %6668 = vmatmul.mubr.msk.bf16.vlgmr.msra.gmra.mrb[0].mxu1 %vm203_vm1, %v6664_v5 }
 0x1ea   : > { %v4811_v54 = vpop.permute.xlu1 %4810  ;;  %v4809_v19 = vpop.permute.xlu0 %4808  ;;  %5003 = vmatprep.mubr.bf16.mxu1 %v7218_v0 }
 0x1eb   : > { %v4819_v20 = vsel %vm4812_vm6, %v4807_v10, %v4809_v19  ;;  %v4820_v21 = vsel %vm4812_vm6, %v4809_v19, %v4811_v54 }
 0x1ec   : > { %v4843_v4 = vsel %vm207_vm0, %v4819_v20, 0  ;;  %6671 = vmatprep.subr.msk.bf16.mxu1 %vm207_vm0, %v4820_v21 }
 0x1ed   : > { %4972 = vmatpush1.bf16.msra.mxu1 %v4843_v4  ;;  %6670 = vmatmul.mubr.msk.bf16.vlgmr.msra.gmra.mrb[4].mxu0 %vm203_vm1, %v6664_v5 }
 0x1ee   : > { %v5025_v8 = vpop.permute.xlu1 %5024  ;;  %v5023_v22 = vpop.permute.xlu0 %5022  ;;  %5108 = vmatprep.mubr.bf16.mxu0 %v7218_v0 }
 0x1ef   : > { %v5041_v3 = vsel %vm5040_vm7, %v5023_v22, %v5025_v8 }
 0x1f0   : > { %v5053_v25 = vsel %vm207_vm0, %v5041_v3, 0 }
 0x1f1   : > { %6672 = vmatmul.mubr.msk.bf16.vlgmr.msra.gmra.mrb[4].mxu1 %vm203_vm1, %v6664_v5 }
 0x1f2   : > { %v5029_v7 = vpop.permute.xlu1 %5028  ;;  %v5027_v23 = vpop.permute.xlu0 %5026  ;;  %5149 = vmatprep.mubr.bf16.mxu1 %v7218_v0 }
 0x1f3   : > { %v5042_v24 = vsel %vm5040_vm7, %v5025_v8, %v5027_v23  ;;  %v5043_v12 = vsel %vm5040_vm7, %v5027_v23, %v5029_v7 }
 0x1f4   : > { %6674 = vmatprep.subr.msk.bf16.mxu0 %vm207_vm0, %v5042_v24  ;;  %v5059_v13 = vsel %vm207_vm0, %v5043_v12, 0 }
 0x1f5   : > { %5077 = vmatpush1.bf16.msra.mxu0 %v5053_v25 }
 0x1f6   : > { %v5033_v27 = vpop.permute.xlu1 %5032  ;;  %v5031_v28 = vpop.permute.xlu0 %5030 }
 0x1f7   : > { %v5044_v29 = vsel %vm5040_vm7, %v5029_v7, %v5031_v28  ;;  %v5045_v30 = vsel %vm5040_vm7, %v5031_v28, %v5033_v27 }
 0x1f8   : > { %6676 = vmatprep.subr.msk.bf16.mxu1 %vm207_vm0, %v5044_v29  ;;  %6675 = vmatmul.mubr.msk.bf16.vlgmr.msra.gmra.mrb[0].mxu0 %vm203_vm1, %v6673_v26  ;;  %v5065_v35 = vsel %vm207_vm0, %v5045_v30, 0 }
 0x1f9   : > { %5118 = vmatpush1.bf16.msra.mxu1 %v5059_v13  ;;  %5190 = vmatprep.mubr.bf16.mxu0 %v7218_v0 }
 0x1fa   : > { %v5037_v32 = vpop.permute.xlu1 %5036  ;;  %v5035_v33 = vpop.permute.xlu0 %5034 }
 0x1fb   : > { %v5046_v34 = vsel %vm5040_vm7, %v5033_v27, %v5035_v33  ;;  %v5047_v36 = vsel %vm5040_vm7, %v5035_v33, %v5037_v32  ;;  %v6700_v27 = vld [vmem:[%s8491_s1 + $0x60] sm:$0xf] }
 0x1fc   : > { %6678 = vmatprep.subr.msk.bf16.mxu0 %vm207_vm0, %v5046_v34  ;;  %6677 = vmatmul.mubr.msk.bf16.vlgmr.msra.gmra.mrb[0].mxu1 %vm203_vm1, %v6673_v26  ;;  %v5071_v42 = vsel %vm207_vm0, %v5047_v36, 0 }
 0x1fd   : > { %5159 = vmatpush1.bf16.msra.mxu0 %v5065_v35  ;;  %5231 = vmatprep.mubr.bf16.mxu1 %v7218_v0 }
 0x1fe   : > { %v5251_v37 = vpop.permute.xlu1 %5250  ;;  %v5039_v40 = vpop.permute.xlu0 %5038 }
 0x1ff   : > { %v5048_v41 = vsel %vm5040_vm7, %v5037_v32, %v5039_v40 }
 0x200   : > { %6680 = vmatprep.subr.msk.bf16.mxu1 %vm207_vm0, %v5048_v41  ;;  %6679 = vmatmul.mubr.msk.bf16.vlgmr.msra.gmra.mrb[4].mxu0 %vm203_vm1, %v6673_v26 }
 0x201   : > { %5200 = vmatpush1.bf16.msra.mxu1 %v5071_v42  ;;  %5336 = vmatprep.mubr.bf16.mxu0 %v7218_v0 }
 0x202   : > { %v5255_v43 = vpop.permute.xlu1 %5254  ;;  %v5253_v44 = vpop.permute.xlu0 %5252 }
 0x203   : > { %v5269_v45 = vsel %vm5268_vm8, %v5251_v37, %v5253_v44  ;;  %v5270_v48 = vsel %vm5268_vm8, %v5253_v44, %v5255_v43 }
 0x204   : > { %v5281_v49 = vsel %vm207_vm0, %v5269_v45, 0  ;;  %6683 = vmatprep.subr.msk.bf16.mxu0 %vm207_vm0, %v5270_v48  ;;  %6681 = vmatmul.mubr.msk.bf16.vlgmr.msra.gmra.mrb[4].mxu1 %vm203_vm1, %v6673_v26 }
 0x205   : > { %5305 = vmatpush1.bf16.msra.mxu0 %v5281_v49  ;;  %5377 = vmatprep.mubr.bf16.mxu1 %v7218_v0 }
 0x206   : > { %v5259_v50 = vpop.permute.xlu1 %5258  ;;  %v5257_v51 = vpop.permute.xlu0 %5256 }
 0x207   : > { %v5271_v52 = vsel %vm5268_vm8, %v5255_v43, %v5257_v51  ;;  %v5272_v55 = vsel %vm5268_vm8, %v5257_v51, %v5259_v50 }
 0x208   : > { %v5287_v56 = vsel %vm207_vm0, %v5271_v52, 0  ;;  %6685 = vmatprep.subr.msk.bf16.mxu1 %vm207_vm0, %v5272_v55  ;;  %6684 = vmatmul.mubr.msk.bf16.vlgmr.msra.gmra.mrb[0].mxu0 %vm203_vm1, %v6682_v18 }
 0x209   : > { %5346 = vmatpush1.bf16.msra.mxu1 %v5287_v56  ;;  %5418 = vmatprep.mubr.bf16.mxu0 %v7218_v0  ;;  %v6709_v56 = vld [vmem:[%s8491_s1 + $0x64] sm:$0xf] }
 0x20a   : > { %v5263_v57 = vpop.permute.xlu1 %5262  ;;  %v5261_v11 = vpop.permute.xlu0 %5260 }
 0x20b   : > { %v5273_v58 = vsel %vm5268_vm8, %v5259_v50, %v5261_v11  ;;  %v5274_v59 = vsel %vm5268_vm8, %v5261_v11, %v5263_v57 }
 0x20c   : > { %v5293_v60 = vsel %vm207_vm0, %v5273_v58, 0  ;;  %6687 = vmatprep.subr.msk.bf16.mxu0 %vm207_vm0, %v5274_v59  ;;  %6686 = vmatmul.mubr.msk.bf16.vlgmr.msra.gmra.mrb[0].mxu1 %vm203_vm1, %v6682_v18 }
 0x20d   : > { %5387 = vmatpush1.bf16.msra.mxu0 %v5293_v60  ;;  %5459 = vmatprep.mubr.bf16.mxu1 %v7218_v0 }
 0x20e   : > { %v5267_v61 = vpop.permute.xlu1 %5266  ;;  %v5265_v14 = vpop.permute.xlu0 %5264 }
 0x20f   : > { %v5275_v31 = vsel %vm5268_vm8, %v5263_v57, %v5265_v14  ;;  %v5276_v62 = vsel %vm5268_vm8, %v5265_v14, %v5267_v61 }
 0x210   : > { %v5299_v63 = vsel %vm207_vm0, %v5275_v31, 0  ;;  %6689 = vmatprep.subr.msk.bf16.mxu1 %vm207_vm0, %v5276_v62  ;;  %6688 = vmatmul.mubr.msk.bf16.vlgmr.msra.gmra.mrb[4].mxu0 %vm203_vm1, %v6682_v18 }
 0x211   : > { %5428 = vmatpush1.bf16.msra.mxu1 %v5299_v63  ;;  %5564 = vmatprep.mubr.bf16.mxu0 %v7218_v0 }
 0x212   : > { %v5481_v1 = vpop.permute.xlu1 %5480  ;;  %v5479_v38 = vpop.permute.xlu0 %5478 }
 0x213   : > { %v5497_v39 = vsel %vm5496_vm9, %v5479_v38, %v5481_v1 }
 0x214   : > { %6690 = vmatmul.mubr.msk.bf16.vlgmr.msra.gmra.mrb[4].mxu1 %vm203_vm1, %v6682_v18  ;;  %v5509_v46 = vsel %vm207_vm0, %v5497_v39, 0 }
 0x215   : > { %5605 = vmatprep.mubr.bf16.mxu1 %v7218_v0 }
 0x216   : > { %v5485_v2 = vpop.permute.xlu1 %5484  ;;  %v5483_v5 = vpop.permute.xlu0 %5482 }
 0x217   : > { %v5498_v6 = vsel %vm5496_vm9, %v5481_v1, %v5483_v5  ;;  %v5499_v9 = vsel %vm5496_vm9, %v5483_v5, %v5485_v2 }
 0x218   : > { %6692 = vmatprep.subr.msk.bf16.mxu0 %vm207_vm0, %v5498_v6  ;;  %v5515_v53 = vsel %vm207_vm0, %v5499_v9, 0 }
 0x219   : > { %5533 = vmatpush1.bf16.msra.mxu0 %v5509_v46 }
 0x21a   : > { %v5489_v10 = vpop.permute.xlu1 %5488  ;;  %v5487_v15 = vpop.permute.xlu0 %5486 }
 0x21b   : > { %v5500_v16 = vsel %vm5496_vm9, %v5485_v2, %v5487_v15  ;;  %v5501_v17 = vsel %vm5496_vm9, %v5487_v15, %v5489_v10 }
 0x21c   : > { %6694 = vmatprep.subr.msk.bf16.mxu1 %vm207_vm0, %v5500_v16  ;;  %6693 = vmatmul.mubr.msk.bf16.vlgmr.msra.gmra.mrb[0].mxu0 %vm203_vm1, %v6691_v47  ;;  %v5521_v21 = vsel %vm207_vm0, %v5501_v17, 0 }
 0x21d   : > { %5574 = vmatpush1.bf16.msra.mxu1 %v5515_v53  ;;  %5646 = vmatprep.mubr.bf16.mxu0 %v7218_v0 }
 0x21e   : > { %v5493_v54 = vpop.permute.xlu1 %5492  ;;  %v5491_v19 = vpop.permute.xlu0 %5490 }
 0x21f   : > { %v5502_v20 = vsel %vm5496_vm9, %v5489_v10, %v5491_v19  ;;  %v5503_v4 = vsel %vm5496_vm9, %v5491_v19, %v5493_v54  ;;  %v6718_v10 = vld [vmem:[%s8491_s1 + $0x68] sm:$0xf] }
 0x220   : > { %6696 = vmatprep.subr.msk.bf16.mxu0 %vm207_vm0, %v5502_v20  ;;  %6695 = vmatmul.mubr.msk.bf16.vlgmr.msra.gmra.mrb[0].mxu1 %vm203_vm1, %v6691_v47  ;;  %v5527_v7 = vsel %vm207_vm0, %v5503_v4, 0 }
 0x221   : > { %5615 = vmatpush1.bf16.msra.mxu0 %v5521_v21  ;;  %5687 = vmatprep.mubr.bf16.mxu1 %v7218_v0 }
 0x222   : > { %v5707_v8 = vpop.permute.xlu1 %5706  ;;  %v5495_v22 = vpop.permute.xlu0 %5494 }
 0x223   : > { %v5504_v3 = vsel %vm5496_vm9, %v5493_v54, %v5495_v22 }
 0x224   : > { %6698 = vmatprep.subr.msk.bf16.mxu1 %vm207_vm0, %v5504_v3  ;;  %6697 = vmatmul.mubr.msk.bf16.vlgmr.msra.gmra.mrb[4].mxu0 %vm203_vm1, %v6691_v47 }
 0x225   : > { %5656 = vmatpush1.bf16.msra.mxu1 %v5527_v7  ;;  %5792 = vmatprep.mubr.bf16.mxu0 %v7218_v0 }
 0x226   : > { %v5711_v23 = vpop.permute.xlu1 %5710  ;;  %v5709_v24 = vpop.permute.xlu0 %5708 }
 0x227   : > { %v5725_v25 = vsel %vm5724_vm10, %v5707_v8, %v5709_v24  ;;  %v5726_v12 = vsel %vm5724_vm10, %v5709_v24, %v5711_v23 }
 0x228   : > { %v5737_v26 = vsel %vm207_vm0, %v5725_v25, 0  ;;  %6701 = vmatprep.subr.msk.bf16.mxu0 %vm207_vm0, %v5726_v12  ;;  %6699 = vmatmul.mubr.msk.bf16.vlgmr.msra.gmra.mrb[4].mxu1 %vm203_vm1, %v6691_v47 }
 0x229   : > { %5761 = vmatpush1.bf16.msra.mxu0 %v5737_v26  ;;  %5833 = vmatprep.mubr.bf16.mxu1 %v7218_v0 }
 0x22a   : > { %v5715_v28 = vpop.permute.xlu1 %5714  ;;  %v5713_v29 = vpop.permute.xlu0 %5712 }
 0x22b   : > { %v5727_v13 = vsel %vm5724_vm10, %v5711_v23, %v5713_v29  ;;  %v5728_v30 = vsel %vm5724_vm10, %v5713_v29, %v5715_v28 }
 0x22c   : > { %v5743_v32 = vsel %vm207_vm0, %v5727_v13, 0  ;;  %6703 = vmatprep.subr.msk.bf16.mxu1 %vm207_vm0, %v5728_v30  ;;  %6702 = vmatmul.mubr.msk.bf16.vlgmr.msra.gmra.mrb[0].mxu0 %vm203_vm1, %v6700_v27 }
 0x22d   : > { %5802 = vmatpush1.bf16.msra.mxu1 %v5743_v32  ;;  %5874 = vmatprep.mubr.bf16.mxu0 %v7218_v0 }
 0x22e   : > { %v5719_v33 = vpop.permute.xlu1 %5718  ;;  %v5717_v34 = vpop.permute.xlu0 %5716 }
 0x22f   : > { %v5729_v35 = vsel %vm5724_vm10, %v5715_v28, %v5717_v34  ;;  %v5730_v36 = vsel %vm5724_vm10, %v5717_v34, %v5719_v33 }
 0x230   : > { %v5749_v37 = vsel %vm207_vm0, %v5729_v35, 0  ;;  %6705 = vmatprep.subr.msk.bf16.mxu0 %vm207_vm0, %v5730_v36  ;;  %6704 = vmatmul.mubr.msk.bf16.vlgmr.msra.gmra.mrb[0].mxu1 %vm203_vm1, %v6700_v27 }
 0x231   : > { %5843 = vmatpush1.bf16.msra.mxu0 %v5749_v37  ;;  %5915 = vmatprep.mubr.bf16.mxu1 %v7218_v0 }
 0x232   : > { %v5723_v40 = vpop.permute.xlu1 %5722  ;;  %v5721_v41 = vpop.permute.xlu0 %5720 }
 0x233   : > { %v5731_v42 = vsel %vm5724_vm10, %v5719_v33, %v5721_v41  ;;  %v5732_v43 = vsel %vm5724_vm10, %v5721_v41, %v5723_v40 }
 0x234   : > { %v5755_v44 = vsel %vm207_vm0, %v5731_v42, 0  ;;  %6707 = vmatprep.subr.msk.bf16.mxu1 %vm207_vm0, %v5732_v43  ;;  %6706 = vmatmul.mubr.msk.bf16.vlgmr.msra.gmra.mrb[4].mxu0 %vm203_vm1, %v6700_v27 }
 0x235   : > { %5884 = vmatpush1.bf16.msra.mxu1 %v5755_v44  ;;  %6020 = vmatprep.mubr.bf16.mxu0 %v7218_v0 }
 0x236   : > { %v5937_v45 = vpop.permute.xlu1 %5936  ;;  %v5935_v48 = vpop.permute.xlu0 %5934 }
 0x237   : > { %v5953_v49 = vsel %vm5952_vm11, %v5935_v48, %v5937_v45 }
 0x238   : > { %6708 = vmatmul.mubr.msk.bf16.vlgmr.msra.gmra.mrb[4].mxu1 %vm203_vm1, %v6700_v27  ;;  %v5965_v52 = vsel %vm207_vm0, %v5953_v49, 0 }
 0x239   : > { %6061 = vmatprep.mubr.bf16.mxu1 %v7218_v0 }
 0x23a   : > { %v5941_v18 = vpop.permute.xlu1 %5940  ;;  %v5939_v50 = vpop.permute.xlu0 %5938 }
 0x23b   : > { %v5954_v51 = vsel %vm5952_vm11, %v5937_v45, %v5939_v50  ;;  %v5955_v55 = vsel %vm5952_vm11, %v5939_v50, %v5941_v18 }
 0x23c   : > { %6710 = vmatprep.subr.msk.bf16.mxu0 %vm207_vm0, %v5954_v51  ;;  %v5971_v59 = vsel %vm207_vm0, %v5955_v55, 0 }
 0x23d   : > { %5989 = vmatpush1.bf16.msra.mxu0 %v5965_v52 }
 0x23e   : > { %v5945_v57 = vpop.permute.xlu1 %5944  ;;  %v5943_v11 = vpop.permute.xlu0 %5942 }
 0x23f   : > { %v5956_v58 = vsel %vm5952_vm11, %v5941_v18, %v5943_v11  ;;  %v5957_v60 = vsel %vm5952_vm11, %v5943_v11, %v5945_v57 }
 0x240   : > { %6711 = vmatmul.mubr.msk.bf16.vlgmr.msra.gmra.mrb[0].mxu0 %vm203_vm1, %v6709_v56  ;;  %6712 = vmatprep.subr.msk.bf16.mxu1 %vm207_vm0, %v5956_v58  ;;  %v5977_v62 = vsel %vm207_vm0, %v5957_v60, 0 }
 0x241   : > { %6030 = vmatpush1.bf16.msra.mxu1 %v5971_v59  ;;  %6102 = vmatprep.mubr.bf16.mxu0 %v7218_v0 }
 0x242   : > { %v5949_v61 = vpop.permute.xlu1 %5948  ;;  %v5947_v14 = vpop.permute.xlu0 %5946 }
 0x243   : > { %v5958_v31 = vsel %vm5952_vm11, %v5945_v57, %v5947_v14  ;;  %v5959_v63 = vsel %vm5952_vm11, %v5947_v14, %v5949_v61 }
 0x244   : > { %6713 = vmatmul.mubr.msk.bf16.vlgmr.msra.gmra.mrb[0].mxu1 %vm203_vm1, %v6709_v56  ;;  %6714 = vmatprep.subr.msk.bf16.mxu0 %vm207_vm0, %v5958_v31  ;;  %v5983_v2 = vsel %vm207_vm0, %v5959_v63, 0 }
 0x245   : > { %6071 = vmatpush1.bf16.msra.mxu0 %v5977_v62  ;;  %6143 = vmatprep.mubr.bf16.mxu1 %v7218_v0 }
 0x246   : > { %v6163_v1 = vpop.permute.xlu1 %6162  ;;  %v5951_v38 = vpop.permute.xlu0 %5950 }
 0x247   : > { %v5960_v39 = vsel %vm5952_vm11, %v5949_v61, %v5951_v38 }
 0x248   : > { %6715 = vmatmul.mubr.msk.bf16.vlgmr.msra.gmra.mrb[4].mxu0 %vm203_vm1, %v6709_v56  ;;  %6716 = vmatprep.subr.msk.bf16.mxu1 %vm207_vm0, %v5960_v39 }
 0x249   : > { %6112 = vmatpush1.bf16.msra.mxu1 %v5983_v2  ;;  %6248 = vmatprep.mubr.bf16.mxu0 %v7218_v0 }
 0x24a   : > { %v6167_v5 = vpop.permute.xlu1 %6166  ;;  %v6165_v6 = vpop.permute.xlu0 %6164 }
 0x24b   : > { %v6181_v46 = vsel %vm6180_vm12, %v6163_v1, %v6165_v6  ;;  %v6182_v9 = vsel %vm6180_vm12, %v6165_v6, %v6167_v5 }
 0x24c   : > { %v6193_v47 = vsel %vm207_vm0, %v6181_v46, 0  ;;  %6717 = vmatmul.mubr.msk.bf16.vlgmr.msra.gmra.mrb[4].mxu1 %vm203_vm1, %v6709_v56  ;;  %6719 = vmatprep.subr.msk.bf16.mxu0 %vm207_vm0, %v6182_v9 }
 0x24d   : > { %6217 = vmatpush1.bf16.msra.mxu0 %v6193_v47  ;;  %6289 = vmatprep.mubr.bf16.mxu1 %v7218_v0 }
 0x24e   : > { %v6171_v15 = vpop.permute.xlu1 %6170  ;;  %v6169_v16 = vpop.permute.xlu0 %6168 }
 0x24f   : > { %v6183_v53 = vsel %vm6180_vm12, %v6167_v5, %v6169_v16  ;;  %v6184_v17 = vsel %vm6180_vm12, %v6169_v16, %v6171_v15 }
 0x250   : > { %v6199_v54 = vsel %vm207_vm0, %v6183_v53, 0  ;;  %6720 = vmatmul.mubr.msk.bf16.vlgmr.msra.gmra.mrb[0].mxu0 %vm203_vm1, %v6718_v10  ;;  %6721 = vmatprep.subr.msk.bf16.mxu1 %vm207_vm0, %v6184_v17 }
 0x251   : > { %6258 = vmatpush1.bf16.msra.mxu1 %v6199_v54  ;;  %6330 = vmatprep.mubr.bf16.mxu0 %v7218_v0 }
 0x252   : > { %v6175_v19 = vpop.permute.xlu1 %6174  ;;  %v6173_v20 = vpop.permute.xlu0 %6172 }
 0x253   : > { %v6185_v21 = vsel %vm6180_vm12, %v6171_v15, %v6173_v20  ;;  %v6186_v4 = vsel %vm6180_vm12, %v6173_v20, %v6175_v19 }
 0x254   : > { %v6205_v8 = vsel %vm207_vm0, %v6185_v21, 0  ;;  %6722 = vmatmul.mubr.msk.bf16.vlgmr.msra.gmra.mrb[0].mxu1 %vm203_vm1, %v6718_v10  ;;  %6723 = vmatprep.subr.msk.bf16.mxu0 %vm207_vm0, %v6186_v4 }
 0x255   : > { %6299 = vmatpush1.bf16.msra.mxu0 %v6205_v8  ;;  %6371 = vmatprep.mubr.bf16.mxu1 %v7218_v0 }
 0x256   : > { %v6179_v22 = vpop.permute.xlu1 %6178  ;;  %v6177_v3 = vpop.permute.xlu0 %6176 }
 0x257   : > { %v6187_v7 = vsel %vm6180_vm12, %v6175_v19, %v6177_v3  ;;  %v6188_v23 = vsel %vm6180_vm12, %v6177_v3, %v6179_v22 }
 0x258   : > { %v6211_v24 = vsel %vm207_vm0, %v6187_v7, 0  ;;  %6724 = vmatmul.mubr.msk.bf16.vlgmr.msra.gmra.mrb[4].mxu0 %vm203_vm1, %v6718_v10  ;;  %6725 = vmatprep.subr.msk.bf16.mxu1 %vm207_vm0, %v6188_v23 }
 0x259   : > { %6340 = vmatpush1.bf16.msra.mxu1 %v6211_v24 }
 0x25c   : > { %6726 = vmatmul.mubr.msk.bf16.vlgmr.msra.gmra.mrb[4].mxu1 %vm203_vm1, %v6718_v10 }
 0x267   : > { %v176_v25 = vpop.permute.xlu0 %175 }
 0x323   : > { %v6250_v0 = vpop.f32.mrb[0].mxu0 }
 0x324   : > { %v6730_v12 = vadd.f32 %v6250_v0, %v176_v25  ;;  %v6252_v26 = vpop.f32.mrb[1].mxu0 }
 0x325   : > { %v6731_v27 = vadd.f32 %v6252_v26, %v176_v25  ;;  %v6254_v28 = vpop.f32.mrb[2].mxu0 }
 0x326   : > { %6388 = vst [vmem:[%s8477_s29] sm:$0xff] %v6730_v12  ;;  %v6255_v29 = vpop.f32.mrb[3].mxu0 }
 0x327   : > { %6389 = vst [vmem:[%s8477_s29 + $0x8] sm:$0xff] %v6731_v27  ;;  %v6291_v13 = vpop.f32.mrb[0].mxu1 }
 0x328   : > { %v6732_v30 = vadd.f32 %v6291_v13, %v176_v25  ;;  %v6293_v32 = vpop.f32.mrb[1].mxu1 }
 0x329   : > { %v6733_v33 = vadd.f32 %v6293_v32, %v176_v25  ;;  %v6295_v34 = vpop.f32.mrb[2].mxu1 }
 0x32a   : > { %6390 = vst [vmem:[%s8477_s29 + $0x10] sm:$0xff] %v6732_v30  ;;  %v6296_v35 = vpop.f32.mrb[3].mxu1 }
 0x32b   : > { %6391 = vst [vmem:[%s8477_s29 + $0x18] sm:$0xff] %v6733_v33  ;;  %v6332_v36 = vpop.f32.mrb[4].mxu0 }
 0x32c   : > { %v6734_v37 = vadd.f32 %v6332_v36, %v176_v25  ;;  %v6334_v40 = vpop.f32.mrb[5].mxu0 }
 0x32d   : > { %v6735_v41 = vadd.f32 %v6334_v40, %v176_v25  ;;  %v6336_v42 = vpop.f32.mrb[6].mxu0 }
 0x32e   : > { %6392 = vst [vmem:[%s8477_s29 + $0x20] sm:$0xff] %v6734_v37  ;;  %v6337_v43 = vpop.f32.mrb[7].mxu0 }
 0x32f   : > { %6393 = vst [vmem:[%s8477_s29 + $0x28] sm:$0xff] %v6735_v41  ;;  %v6373_v44 = vpop.f32.mrb[4].mxu1 }
 0x330   : > { %v6736_v45 = vadd.f32 %v6373_v44, %v176_v25  ;;  %v6375_v48 = vpop.f32.mrb[5].mxu1 }
 0x331   : > { %v6737_v49 = vadd.f32 %v6375_v48, %v176_v25  ;;  %v6377_v18 = vpop.f32.mrb[6].mxu1 }
 0x332   : > { %6394 = vst [vmem:[%s8477_s29 + $0x30] sm:$0xff] %v6736_v45  ;;  %v6378_v50 = vpop.f32.mrb[7].mxu1 }
 0x333   : > { %6395 = vst [vmem:[%s8477_s29 + $0x38] sm:$0xff] %v6737_v49 }
 0x334 PF: > { %s13_s12 = sadd.s32 1, %s7216_s12  }
 0x335   : > { %p10_p4 = scmp.ge.s32.totalorder %s13_s12, 4  }
 0x337   :  { %12 = sbr.rel (!%p10_p4) target bundleno = 1 (0x1), region = 88 }

</bundles_post_ra>
